<compile_context>
chip_gen: v7x
topology: tpu7x:2x2x1
jax: 0.10.0
libtpu: 0.0.40
codegen_flags: <defaults>
</compile_context>

<pallas_src>
import functools

import jax
import jax.numpy as jnp
from jax.experimental import pallas as pl
from jax.experimental.pallas import tpu as pltpu

_LANE = 128


def _silu(x):
    # SiLU / swish: x * sigmoid(x), computed in f32.
    return x * jax.nn.sigmoid(x)


def _round_up(n, m):
    return ((n + m - 1) // m) * m


def _pad_last2(a, rows, cols):
    pads = [(0, 0)] * (a.ndim - 2) + [(0, rows - a.shape[-2]),
                                      (0, cols - a.shape[-1])]
    return jnp.pad(a, pads)


def resmlp_kernel(x_ref, w_in_ref, b_in_ref, w1_ref, b1_ref, w2_ref, b2_ref,
                  w_out_ref, b_out_ref, o_ref, *, num_layers):
    cdt = w_in_ref.dtype  # matmul operand dtype (bf16 by default)

    # Input projection + SiLU (accumulate in f32, SiLU in f32).
    x = x_ref[...].astype(cdt)
    h = _silu(jnp.dot(x, w_in_ref[...], preferred_element_type=jnp.float32)
              + b_in_ref[...])

    # Residual MLP blocks; num_layers is small & static -> unrolled.
    for l in range(num_layers):
        t = _silu(jnp.dot(h.astype(cdt), w1_ref[l],
                          preferred_element_type=jnp.float32) + b1_ref[l])
        u = _silu(jnp.dot(t.astype(cdt), w2_ref[l],
                          preferred_element_type=jnp.float32) + b2_ref[l])
        h = h + u

    # Output projection (no activation).
    y = (jnp.dot(h.astype(cdt), w_out_ref[...],
                 preferred_element_type=jnp.float32) + b_out_ref[...])
    o_ref[...] = y.astype(o_ref.dtype)


def resmlp_forward(x, params, *, num_layers, tile_b=128,
                   compute_dtype=jnp.bfloat16, single_buffer_weights=True):
    """x: (B, input_dim) float32. params: dict of pre-transposed f32 weights."""
    B, input_dim = x.shape
    hidden_dim = params["w_in"].shape[1]
    interm_dim = params["w1"].shape[2]
    output_dim = params["w_out"].shape[1]

    # --- pad feature dims to lane-dense multiples of 128 (exact: zero pad) ---
    dinp = _round_up(input_dim, _LANE)
    hp = _round_up(hidden_dim, _LANE)
    ip = _round_up(interm_dim, _LANE)
    dop = _round_up(output_dim, _LANE)

    # --- batch tiling: big tiles to feed the MXU rows, padded batch ---
    tb = max(8, _round_up(min(tile_b, _round_up(B, 8)), 8))
    Bp = _round_up(B, tb)
    grid = (Bp // tb,)

    cdt = compute_dtype
    xp = _pad_last2(x, Bp, dinp).astype(cdt)
    w_in = _pad_last2(params["w_in"], dinp, hp).astype(cdt)
    b_in = _pad_last2(params["b_in"], 1, hp).astype(jnp.float32)
    w1 = _pad_last2(params["w1"], hp, ip).astype(cdt)
    b1 = _pad_last2(params["b1"], 1, ip).astype(jnp.float32)
    w2 = _pad_last2(params["w2"], ip, hp).astype(cdt)
    b2 = _pad_last2(params["b2"], 1, hp).astype(jnp.float32)
    w_out = _pad_last2(params["w_out"], hp, dop).astype(cdt)
    b_out = _pad_last2(params["b_out"], 1, dop).astype(jnp.float32)

    # --- VMEM budget: weights + double-buffered io tiles + intermediates ---
    itemsize = jnp.dtype(cdt).itemsize
    weight_bytes = ((dinp * hp + num_layers * 2 * hp * ip + hp * dop) * itemsize
                    + (hp + num_layers * (ip + hp) + dop) * 4)
    io_bytes = 2 * 2 * tb * (dinp * itemsize + dop * 4)
    live_bytes = 6 * tb * max(dinp, hp, ip, dop) * 4
    vmem_limit = int(min(max(2 * weight_bytes + io_bytes + live_bytes + (4 << 20),
                             32 << 20), 64 << 20))

    kernel = functools.partial(resmlp_kernel, num_layers=num_layers)
    args = (xp, w_in, b_in, w1, b1, w2, b2, w_out, b_out)

    def _build(weight_mode):
        wkw = {} if weight_mode is None else {"pipeline_mode": weight_mode}

        def rep2(shape):
            return pl.BlockSpec(shape, lambda i: (0, 0), **wkw)

        def rep3(shape):
            return pl.BlockSpec(shape, lambda i: (0, 0, 0), **wkw)

        in_specs = [
            # activations: tile over batch
            pl.BlockSpec((tb, dinp), lambda i: (i, 0)),
            # weights / biases: full blocks, constant index across the grid
            rep2((dinp, hp)),
            rep2((1, hp)),
            rep3((num_layers, hp, ip)),
            rep3((num_layers, 1, ip)),
            rep3((num_layers, ip, hp)),
            rep3((num_layers, 1, hp)),
            rep2((hp, dop)),
            rep2((1, dop)),
        ]
        return pl.pallas_call(
            kernel,
            out_shape=jax.ShapeDtypeStruct((Bp, dop), jnp.float32),
            grid_spec=pltpu.PrefetchScalarGridSpec(
                num_scalar_prefetch=0,
                grid=grid,
                in_specs=in_specs,
                out_specs=pl.BlockSpec((tb, dop), lambda i: (i, 0)),
            ),
            compiler_params=pltpu.CompilerParams(
                dimension_semantics=("parallel",),
                vmem_limit_bytes=vmem_limit),
        )

    try:
        mode = pl.Buffered(1) if single_buffer_weights else None
        yp = _build(mode)(*args)
    except Exception:
        # Fallback if single-buffered pipeline_mode is unavailable/unsupported.
        yp = _build(None)(*args)

    return yp[:B, :output_dim].astype(x.dtype)


def init_params(key, input_dim, output_dim, hidden_dim, interm_dim, num_layers):
    """nn.Linear-style U(-1/sqrt(fan_in), 1/sqrt(fan_in)) init.
    Weights stored pre-transposed as (in_features, out_features), f32."""
    keys = jax.random.split(key, 4 + 4 * num_layers)
    ki = iter(keys)

    def linear(k, fan_in, fan_out):
        kw, kb = jax.random.split(k)
        bound = 1.0 / jnp.sqrt(fan_in)
        w = jax.random.uniform(kw, (fan_in, fan_out), jnp.float32, -bound, bound)
        b = jax.random.uniform(kb, (1, fan_out), jnp.float32, -bound, bound)
        return w, b

    w_in, b_in = linear(next(ki), input_dim, hidden_dim)
    w1s, b1s, w2s, b2s = [], [], [], []
    for _ in range(num_layers):
        w1, b1 = linear(next(ki), hidden_dim, interm_dim)
        w2, b2 = linear(next(ki), interm_dim, hidden_dim)
        w1s.append(w1); b1s.append(b1); w2s.append(w2); b2s.append(b2)
    w_out, b_out = linear(next(ki), hidden_dim, output_dim)

    return {
        "w_in": w_in, "b_in": b_in,
        "w1": jnp.stack(w1s), "b1": jnp.stack(b1s),
        "w2": jnp.stack(w2s), "b2": jnp.stack(b2s),
        "w_out": w_out, "b_out": b_out,
    }


def resmlp_reference_f32(x, params, num_layers):
    h = jax.nn.silu(x @ params["w_in"] + params["b_in"])
    for l in range(num_layers):
        t = jax.nn.silu(h @ params["w1"][l] + params["b1"][l])
        u = jax.nn.silu(t @ params["w2"][l] + params["b2"][l])
        h = h + u
    return h @ params["w_out"] + params["b_out"]


def resmlp_reference_lowp(x, params, num_layers, dtype):
    """Reference that mimics the kernel's bf16-operand / f32-accum matmuls."""
    def mm(a, w):
        return jnp.dot(a.astype(dtype), w.astype(dtype),
                       preferred_element_type=jnp.float32)
    h = jax.nn.silu(mm(x, params["w_in"]) + params["b_in"])
    for l in range(num_layers):
        t = jax.nn.silu(mm(h, params["w1"][l]) + params["b1"][l])
        u = jax.nn.silu(mm(t, params["w2"][l]) + params["b2"][l])
        h = h + u
    return mm(h, params["w_out"]) + params["b_out"]


if __name__ == "__main__":
    input_dim, output_dim = 16, 8
    hidden_dim, interm_dim = 32, 64
    num_layers = 2
    batch = 16

    key = jax.random.PRNGKey(0)
    kx, kp = jax.random.split(key)
    x = jax.random.normal(kx, (batch, input_dim), jnp.float32)
    params = init_params(kp, input_dim, output_dim, hidden_dim, interm_dim,
                         num_layers)

    y = resmlp_forward(x, params, num_layers=num_layers)
    y = jax.block_until_ready(y)

    y_ref_lp = resmlp_reference_lowp(x, params, num_layers, jnp.bfloat16)
    y_ref_32 = resmlp_reference_f32(x, params, num_layers)

    assert y.shape == (batch, output_dim)
    # Tight check against a like-for-like (bf16 operand / f32 accum) reference.
    assert jnp.allclose(y, y_ref_lp, atol=2e-3, rtol=2e-3)
    # Loose check against the pure-f32 PyTorch-equivalent reference.
    assert jnp.allclose(y, y_ref_32, atol=5e-2, rtol=5e-2)

    print("KERNEL_OK")
</pallas_src>

<mosaic_0001>
module attributes {stable_mosaic.version = 11 : i64} {
  func.func @resmlp_kernel(%arg0: i32, %arg1: memref<16x128xbf16, #tpu.memory_space<vmem>>, %arg2: memref<128x128xbf16, #tpu.memory_space<vmem>>, %arg3: memref<1x128xf32, #tpu.memory_space<vmem>>, %arg4: memref<2x128x128xbf16, #tpu.memory_space<vmem>>, %arg5: memref<2x1x128xf32, #tpu.memory_space<vmem>>, %arg6: memref<2x128x128xbf16, #tpu.memory_space<vmem>>, %arg7: memref<2x1x128xf32, #tpu.memory_space<vmem>>, %arg8: memref<128x128xbf16, #tpu.memory_space<vmem>>, %arg9: memref<1x128xf32, #tpu.memory_space<vmem>>, %arg10: memref<16x128xf32, #tpu.memory_space<vmem>>) attributes {dimension_semantics = [#tpu.dimension_semantics<parallel>], iteration_bounds = array<i64: 1>, scalar_prefetch = 0 : i64, scratch_operands = 0 : i64, tpu.core_type = #tpu.core_type<tc>, window_params = [{transform_indices = @transform_0, window_bounds = array<i64: 16, 128>}, {pipeline_mode = #tpu.pipeline_mode<synchronous>, transform_indices = @transform_1, window_bounds = array<i64: 128, 128>}, {pipeline_mode = #tpu.pipeline_mode<synchronous>, transform_indices = @transform_2, window_bounds = array<i64: 1, 128>}, {pipeline_mode = #tpu.pipeline_mode<synchronous>, transform_indices = @transform_3, window_bounds = array<i64: 2, 128, 128>}, {pipeline_mode = #tpu.pipeline_mode<synchronous>, transform_indices = @transform_4, window_bounds = array<i64: 2, 1, 128>}, {pipeline_mode = #tpu.pipeline_mode<synchronous>, transform_indices = @transform_5, window_bounds = array<i64: 2, 128, 128>}, {pipeline_mode = #tpu.pipeline_mode<synchronous>, transform_indices = @transform_6, window_bounds = array<i64: 2, 1, 128>}, {pipeline_mode = #tpu.pipeline_mode<synchronous>, transform_indices = @transform_7, window_bounds = array<i64: 128, 128>}, {pipeline_mode = #tpu.pipeline_mode<synchronous>, transform_indices = @transform_8, window_bounds = array<i64: 1, 128>}, {transform_indices = @transform_9, window_bounds = array<i64: 16, 128>}]} {
    %c0 = arith.constant 0 : index
    %c0_0 = arith.constant 0 : index
    %0 = vector.load %arg1[%c0, %c0_0] : memref<16x128xbf16, #tpu.memory_space<vmem>>, vector<16x128xbf16>
    %c0_1 = arith.constant 0 : index
    %c0_2 = arith.constant 0 : index
    %1 = vector.load %arg2[%c0_1, %c0_2] : memref<128x128xbf16, #tpu.memory_space<vmem>>, vector<128x128xbf16>
    %cst = arith.constant dense<0.000000e+00> : vector<16x128xf32>
    %2 = tpu.matmul %0, %1, %cst {dimension_numbers = #tpu.dot_dimension_numbers<[1], [0], [0], [1], [0, 0, 1, 1], [], []>} : vector<16x128xbf16>, vector<128x128xbf16>, vector<16x128xf32> -> vector<16x128xf32>
    %c0_3 = arith.constant 0 : index
    %c0_4 = arith.constant 0 : index
    %3 = vector.load %arg3[%c0_3, %c0_4] : memref<1x128xf32, #tpu.memory_space<vmem>>, vector<1x128xf32>
    %4 = vector.broadcast %3 : vector<1x128xf32> to vector<16x128xf32>
    %5 = arith.addf %2, %4 : vector<16x128xf32>
    %6 = arith.negf %5 : vector<16x128xf32>
    %7 = math.exp %6 : vector<16x128xf32>
    %cst_5 = arith.constant 1.000000e+00 : f32
    %8 = vector.broadcast %cst_5 : f32 to vector<16x128xf32>
    %9 = arith.addf %8, %7 : vector<16x128xf32>
    %10 = arith.divf %8, %9 : vector<16x128xf32>
    %11 = arith.mulf %5, %10 : vector<16x128xf32>
    %12 = arith.truncf %11 : vector<16x128xf32> to vector<16x128xbf16>
    %c0_6 = arith.constant 0 : index
    %c0_7 = arith.constant 0 : index
    %c0_8 = arith.constant 0 : index
    %13 = vector.load %arg4[%c0_6, %c0_7, %c0_8] : memref<2x128x128xbf16, #tpu.memory_space<vmem>>, vector<1x128x128xbf16>
    %14 = vector.shape_cast %13 : vector<1x128x128xbf16> to vector<128x128xbf16>
    %cst_9 = arith.constant dense<0.000000e+00> : vector<16x128xf32>
    %15 = tpu.matmul %12, %14, %cst_9 {dimension_numbers = #tpu.dot_dimension_numbers<[1], [0], [0], [1], [0, 0, 1, 1], [], []>} : vector<16x128xbf16>, vector<128x128xbf16>, vector<16x128xf32> -> vector<16x128xf32>
    %c0_10 = arith.constant 0 : index
    %c0_11 = arith.constant 0 : index
    %c0_12 = arith.constant 0 : index
    %16 = vector.load %arg5[%c0_10, %c0_11, %c0_12] : memref<2x1x128xf32, #tpu.memory_space<vmem>>, vector<1x1x128xf32>
    %17 = vector.shape_cast %16 : vector<1x1x128xf32> to vector<1x128xf32>
    %18 = vector.broadcast %17 : vector<1x128xf32> to vector<16x128xf32>
    %19 = arith.addf %15, %18 : vector<16x128xf32>
    %20 = arith.negf %19 : vector<16x128xf32>
    %21 = math.exp %20 : vector<16x128xf32>
    %cst_13 = arith.constant 1.000000e+00 : f32
    %22 = vector.broadcast %cst_13 : f32 to vector<16x128xf32>
    %23 = arith.addf %22, %21 : vector<16x128xf32>
    %24 = arith.divf %22, %23 : vector<16x128xf32>
    %25 = arith.mulf %19, %24 : vector<16x128xf32>
    %26 = arith.truncf %25 : vector<16x128xf32> to vector<16x128xbf16>
    %c0_14 = arith.constant 0 : index
    %c0_15 = arith.constant 0 : index
    %c0_16 = arith.constant 0 : index
    %27 = vector.load %arg6[%c0_14, %c0_15, %c0_16] : memref<2x128x128xbf16, #tpu.memory_space<vmem>>, vector<1x128x128xbf16>
    %28 = vector.shape_cast %27 : vector<1x128x128xbf16> to vector<128x128xbf16>
    %cst_17 = arith.constant dense<0.000000e+00> : vector<16x128xf32>
    %29 = tpu.matmul %26, %28, %cst_17 {dimension_numbers = #tpu.dot_dimension_numbers<[1], [0], [0], [1], [0, 0, 1, 1], [], []>} : vector<16x128xbf16>, vector<128x128xbf16>, vector<16x128xf32> -> vector<16x128xf32>
    %c0_18 = arith.constant 0 : index
    %c0_19 = arith.constant 0 : index
    %c0_20 = arith.constant 0 : index
    %30 = vector.load %arg7[%c0_18, %c0_19, %c0_20] : memref<2x1x128xf32, #tpu.memory_space<vmem>>, vector<1x1x128xf32>
    %31 = vector.shape_cast %30 : vector<1x1x128xf32> to vector<1x128xf32>
    %32 = vector.broadcast %31 : vector<1x128xf32> to vector<16x128xf32>
    %33 = arith.addf %29, %32 : vector<16x128xf32>
    %34 = arith.negf %33 : vector<16x128xf32>
    %35 = math.exp %34 : vector<16x128xf32>
    %cst_21 = arith.constant 1.000000e+00 : f32
    %36 = vector.broadcast %cst_21 : f32 to vector<16x128xf32>
    %37 = arith.addf %36, %35 : vector<16x128xf32>
    %38 = arith.divf %36, %37 : vector<16x128xf32>
    %39 = arith.mulf %33, %38 : vector<16x128xf32>
    %40 = arith.addf %11, %39 : vector<16x128xf32>
    %41 = arith.truncf %40 : vector<16x128xf32> to vector<16x128xbf16>
    %c1 = arith.constant 1 : index
    %c0_22 = arith.constant 0 : index
    %c0_23 = arith.constant 0 : index
    %42 = vector.load %arg4[%c1, %c0_22, %c0_23] : memref<2x128x128xbf16, #tpu.memory_space<vmem>>, vector<1x128x128xbf16>
    %43 = vector.shape_cast %42 : vector<1x128x128xbf16> to vector<128x128xbf16>
    %cst_24 = arith.constant dense<0.000000e+00> : vector<16x128xf32>
    %44 = tpu.matmul %41, %43, %cst_24 {dimension_numbers = #tpu.dot_dimension_numbers<[1], [0], [0], [1], [0, 0, 1, 1], [], []>} : vector<16x128xbf16>, vector<128x128xbf16>, vector<16x128xf32> -> vector<16x128xf32>
    %c1_25 = arith.constant 1 : index
    %c0_26 = arith.constant 0 : index
    %c0_27 = arith.constant 0 : index
    %45 = vector.load %arg5[%c1_25, %c0_26, %c0_27] : memref<2x1x128xf32, #tpu.memory_space<vmem>>, vector<1x1x128xf32>
    %46 = vector.shape_cast %45 : vector<1x1x128xf32> to vector<1x128xf32>
    %47 = vector.broadcast %46 : vector<1x128xf32> to vector<16x128xf32>
    %48 = arith.addf %44, %47 : vector<16x128xf32>
    %49 = arith.negf %48 : vector<16x128xf32>
    %50 = math.exp %49 : vector<16x128xf32>
    %cst_28 = arith.constant 1.000000e+00 : f32
    %51 = vector.broadcast %cst_28 : f32 to vector<16x128xf32>
    %52 = arith.addf %51, %50 : vector<16x128xf32>
    %53 = arith.divf %51, %52 : vector<16x128xf32>
    %54 = arith.mulf %48, %53 : vector<16x128xf32>
    %55 = arith.truncf %54 : vector<16x128xf32> to vector<16x128xbf16>
    %c1_29 = arith.constant 1 : index
    %c0_30 = arith.constant 0 : index
    %c0_31 = arith.constant 0 : index
    %56 = vector.load %arg6[%c1_29, %c0_30, %c0_31] : memref<2x128x128xbf16, #tpu.memory_space<vmem>>, vector<1x128x128xbf16>
    %57 = vector.shape_cast %56 : vector<1x128x128xbf16> to vector<128x128xbf16>
    %cst_32 = arith.constant dense<0.000000e+00> : vector<16x128xf32>
    %58 = tpu.matmul %55, %57, %cst_32 {dimension_numbers = #tpu.dot_dimension_numbers<[1], [0], [0], [1], [0, 0, 1, 1], [], []>} : vector<16x128xbf16>, vector<128x128xbf16>, vector<16x128xf32> -> vector<16x128xf32>
    %c1_33 = arith.constant 1 : index
    %c0_34 = arith.constant 0 : index
    %c0_35 = arith.constant 0 : index
    %59 = vector.load %arg7[%c1_33, %c0_34, %c0_35] : memref<2x1x128xf32, #tpu.memory_space<vmem>>, vector<1x1x128xf32>
    %60 = vector.shape_cast %59 : vector<1x1x128xf32> to vector<1x128xf32>
    %61 = vector.broadcast %60 : vector<1x128xf32> to vector<16x128xf32>
    %62 = arith.addf %58, %61 : vector<16x128xf32>
    %63 = arith.negf %62 : vector<16x128xf32>
    %64 = math.exp %63 : vector<16x128xf32>
    %cst_36 = arith.constant 1.000000e+00 : f32
    %65 = vector.broadcast %cst_36 : f32 to vector<16x128xf32>
    %66 = arith.addf %65, %64 : vector<16x128xf32>
    %67 = arith.divf %65, %66 : vector<16x128xf32>
    %68 = arith.mulf %62, %67 : vector<16x128xf32>
    %69 = arith.addf %40, %68 : vector<16x128xf32>
    %70 = arith.truncf %69 : vector<16x128xf32> to vector<16x128xbf16>
    %c0_37 = arith.constant 0 : index
    %c0_38 = arith.constant 0 : index
    %71 = vector.load %arg8[%c0_37, %c0_38] : memref<128x128xbf16, #tpu.memory_space<vmem>>, vector<128x128xbf16>
    %cst_39 = arith.constant dense<0.000000e+00> : vector<16x128xf32>
    %72 = tpu.matmul %70, %71, %cst_39 {dimension_numbers = #tpu.dot_dimension_numbers<[1], [0], [0], [1], [0, 0, 1, 1], [], []>} : vector<16x128xbf16>, vector<128x128xbf16>, vector<16x128xf32> -> vector<16x128xf32>
    %c0_40 = arith.constant 0 : index
    %c0_41 = arith.constant 0 : index
    %73 = vector.load %arg9[%c0_40, %c0_41] : memref<1x128xf32, #tpu.memory_space<vmem>>, vector<1x128xf32>
    %74 = vector.broadcast %73 : vector<1x128xf32> to vector<16x128xf32>
    %75 = arith.addf %72, %74 : vector<16x128xf32>
    %c0_42 = arith.constant 0 : index
    %c0_43 = arith.constant 0 : index
    %76 = vector.load %arg10[%c0_42, %c0_43] : memref<16x128xf32, #tpu.memory_space<vmem>>, vector<16x128xf32>
    tpu.vector_store %arg10[%c0_42, %c0_43], %75 {strides = array<i32>} : memref<16x128xf32, #tpu.memory_space<vmem>>, vector<16x128xf32>,
    return
  }
  func.func @transform_0(%arg0: i32) -> (i32, i32) {
    %c0_i32 = arith.constant 0 : i32
    %c0_i32_0 = arith.constant 0 : i32
    return %arg0, %c0_i32 : i32, i32
  }
  func.func @transform_1(%arg0: i32) -> (i32, i32) {
    %c0_i32 = arith.constant 0 : i32
    %c0_i32_0 = arith.constant 0 : i32
    %c0_i32_1 = arith.constant 0 : i32
    return %c0_i32, %c0_i32_0 : i32, i32
  }
  func.func @transform_2(%arg0: i32) -> (i32, i32) {
    %c0_i32 = arith.constant 0 : i32
    %c0_i32_0 = arith.constant 0 : i32
    %c0_i32_1 = arith.constant 0 : i32
    return %c0_i32, %c0_i32_0 : i32, i32
  }
  func.func @transform_3(%arg0: i32) -> (i32, i32, i32) {
    %c0_i32 = arith.constant 0 : i32
    %c0_i32_0 = arith.constant 0 : i32
    %c0_i32_1 = arith.constant 0 : i32
    %c0_i32_2 = arith.constant 0 : i32
    return %c0_i32, %c0_i32_0, %c0_i32_1 : i32, i32, i32
  }
  func.func @transform_4(%arg0: i32) -> (i32, i32, i32) {
    %c0_i32 = arith.constant 0 : i32
    %c0_i32_0 = arith.constant 0 : i32
    %c0_i32_1 = arith.constant 0 : i32
    %c0_i32_2 = arith.constant 0 : i32
    return %c0_i32, %c0_i32_0, %c0_i32_1 : i32, i32, i32
  }
  func.func @transform_5(%arg0: i32) -> (i32, i32, i32) {
    %c0_i32 = arith.constant 0 : i32
    %c0_i32_0 = arith.constant 0 : i32
    %c0_i32_1 = arith.constant 0 : i32
    %c0_i32_2 = arith.constant 0 : i32
    return %c0_i32, %c0_i32_0, %c0_i32_1 : i32, i32, i32
  }
  func.func @transform_6(%arg0: i32) -> (i32, i32, i32) {
    %c0_i32 = arith.constant 0 : i32
    %c0_i32_0 = arith.constant 0 : i32
    %c0_i32_1 = arith.constant 0 : i32
    %c0_i32_2 = arith.constant 0 : i32
    return %c0_i32, %c0_i32_0, %c0_i32_1 : i32, i32, i32
  }
  func.func @transform_7(%arg0: i32) -> (i32, i32) {
    %c0_i32 = arith.constant 0 : i32
    %c0_i32_0 = arith.constant 0 : i32
    %c0_i32_1 = arith.constant 0 : i32
    return %c0_i32, %c0_i32_0 : i32, i32
  }
  func.func @transform_8(%arg0: i32) -> (i32, i32) {
    %c0_i32 = arith.constant 0 : i32
    %c0_i32_0 = arith.constant 0 : i32
    %c0_i32_1 = arith.constant 0 : i32
    return %c0_i32, %c0_i32_0 : i32, i32
  }
  func.func @transform_9(%arg0: i32) -> (i32, i32) {
    %c0_i32 = arith.constant 0 : i32
    %c0_i32_0 = arith.constant 0 : i32
    return %arg0, %c0_i32 : i32, i32
  }
}

module attributes {stable_mosaic.version = 11 : i64} {
  func.func @resmlp_kernel(%arg0: i32, %arg1: memref<16x128xbf16, #tpu.memory_space<vmem>>, %arg2: memref<128x128xbf16, #tpu.memory_space<vmem>>, %arg3: memref<1x128xf32, #tpu.memory_space<vmem>>, %arg4: memref<2x128x128xbf16, #tpu.memory_space<vmem>>, %arg5: memref<2x1x128xf32, #tpu.memory_space<vmem>>, %arg6: memref<2x128x128xbf16, #tpu.memory_space<vmem>>, %arg7: memref<2x1x128xf32, #tpu.memory_space<vmem>>, %arg8: memref<128x128xbf16, #tpu.memory_space<vmem>>, %arg9: memref<1x128xf32, #tpu.memory_space<vmem>>, %arg10: memref<16x128xf32, #tpu.memory_space<vmem>>) attributes {dimension_semantics = [#tpu.dimension_semantics<parallel>], iteration_bounds = array<i64: 1>, scalar_prefetch = 0 : i64, scratch_operands = 0 : i64, tpu.core_type = #tpu.core_type<tc>, window_params = [{transform_indices = @transform_0, window_bounds = array<i64: 16, 128>}, {pipeline_mode = #tpu.pipeline_mode<synchronous>, transform_indices = @transform_1, window_bounds = array<i64: 128, 128>}, {pipeline_mode = #tpu.pipeline_mode<synchronous>, transform_indices = @transform_2, window_bounds = array<i64: 1, 128>}, {pipeline_mode = #tpu.pipeline_mode<synchronous>, transform_indices = @transform_3, window_bounds = array<i64: 2, 128, 128>}, {pipeline_mode = #tpu.pipeline_mode<synchronous>, transform_indices = @transform_4, window_bounds = array<i64: 2, 1, 128>}, {pipeline_mode = #tpu.pipeline_mode<synchronous>, transform_indices = @transform_5, window_bounds = array<i64: 2, 128, 128>}, {pipeline_mode = #tpu.pipeline_mode<synchronous>, transform_indices = @transform_6, window_bounds = array<i64: 2, 1, 128>}, {pipeline_mode = #tpu.pipeline_mode<synchronous>, transform_indices = @transform_7, window_bounds = array<i64: 128, 128>}, {pipeline_mode = #tpu.pipeline_mode<synchronous>, transform_indices = @transform_8, window_bounds = array<i64: 1, 128>}, {transform_indices = @transform_9, window_bounds = array<i64: 16, 128>}]} {
    %c0 = arith.constant 0 : index
    %c0_0 = arith.constant 0 : index
    %0 = vector.load %arg1[%c0, %c0_0] : memref<16x128xbf16, #tpu.memory_space<vmem>>, vector<16x128xbf16>
    %c0_1 = arith.constant 0 : index
    %c0_2 = arith.constant 0 : index
    %1 = vector.load %arg2[%c0_1, %c0_2] : memref<128x128xbf16, #tpu.memory_space<vmem>>, vector<128x128xbf16>
    %cst = arith.constant dense<0.000000e+00> : vector<16x128xf32>
    %2 = tpu.matmul %0, %1, %cst {dimension_numbers = #tpu.dot_dimension_numbers<[1], [0], [0], [1], [0, 0, 1, 1], [], []>} : vector<16x128xbf16>, vector<128x128xbf16>, vector<16x128xf32> -> vector<16x128xf32>
    %c0_3 = arith.constant 0 : index
    %c0_4 = arith.constant 0 : index
    %3 = vector.load %arg3[%c0_3, %c0_4] : memref<1x128xf32, #tpu.memory_space<vmem>>, vector<1x128xf32>
    %4 = vector.broadcast %3 : vector<1x128xf32> to vector<16x128xf32>
    %5 = arith.addf %2, %4 : vector<16x128xf32>
    %6 = arith.negf %5 : vector<16x128xf32>
    %7 = math.exp %6 : vector<16x128xf32>
    %cst_5 = arith.constant 1.000000e+00 : f32
    %8 = vector.broadcast %cst_5 : f32 to vector<16x128xf32>
    %9 = arith.addf %8, %7 : vector<16x128xf32>
    %10 = arith.divf %8, %9 : vector<16x128xf32>
    %11 = arith.mulf %5, %10 : vector<16x128xf32>
    %12 = arith.truncf %11 : vector<16x128xf32> to vector<16x128xbf16>
    %c0_6 = arith.constant 0 : index
    %c0_7 = arith.constant 0 : index
    %c0_8 = arith.constant 0 : index
    %13 = vector.load %arg4[%c0_6, %c0_7, %c0_8] : memref<2x128x128xbf16, #tpu.memory_space<vmem>>, vector<1x128x128xbf16>
    %14 = vector.shape_cast %13 : vector<1x128x128xbf16> to vector<128x128xbf16>
    %cst_9 = arith.constant dense<0.000000e+00> : vector<16x128xf32>
    %15 = tpu.matmul %12, %14, %cst_9 {dimension_numbers = #tpu.dot_dimension_numbers<[1], [0], [0], [1], [0, 0, 1, 1], [], []>} : vector<16x128xbf16>, vector<128x128xbf16>, vector<16x128xf32> -> vector<16x128xf32>
    %c0_10 = arith.constant 0 : index
    %c0_11 = arith.constant 0 : index
    %c0_12 = arith.constant 0 : index
    %16 = vector.load %arg5[%c0_10, %c0_11, %c0_12] : memref<2x1x128xf32, #tpu.memory_space<vmem>>, vector<1x1x128xf32>
    %17 = vector.shape_cast %16 : vector<1x1x128xf32> to vector<1x128xf32>
    %18 = vector.broadcast %17 : vector<1x128xf32> to vector<16x128xf32>
    %19 = arith.addf %15, %18 : vector<16x128xf32>
    %20 = arith.negf %19 : vector<16x128xf32>
    %21 = math.exp %20 : vector<16x128xf32>
    %cst_13 = arith.constant 1.000000e+00 : f32
    %22 = vector.broadcast %cst_13 : f32 to vector<16x128xf32>
    %23 = arith.addf %22, %21 : vector<16x128xf32>
    %24 = arith.divf %22, %23 : vector<16x128xf32>
    %25 = arith.mulf %19, %24 : vector<16x128xf32>
    %26 = arith.truncf %25 : vector<16x128xf32> to vector<16x128xbf16>
    %c0_14 = arith.constant 0 : index
    %c0_15 = arith.constant 0 : index
    %c0_16 = arith.constant 0 : index
    %27 = vector.load %arg6[%c0_14, %c0_15, %c0_16] : memref<2x128x128xbf16, #tpu.memory_space<vmem>>, vector<1x128x128xbf16>
    %28 = vector.shape_cast %27 : vector<1x128x128xbf16> to vector<128x128xbf16>
    %cst_17 = arith.constant dense<0.000000e+00> : vector<16x128xf32>
    %29 = tpu.matmul %26, %28, %cst_17 {dimension_numbers = #tpu.dot_dimension_numbers<[1], [0], [0], [1], [0, 0, 1, 1], [], []>} : vector<16x128xbf16>, vector<128x128xbf16>, vector<16x128xf32> -> vector<16x128xf32>
    %c0_18 = arith.constant 0 : index
    %c0_19 = arith.constant 0 : index
    %c0_20 = arith.constant 0 : index
    %30 = vector.load %arg7[%c0_18, %c0_19, %c0_20] : memref<2x1x128xf32, #tpu.memory_space<vmem>>, vector<1x1x128xf32>
    %31 = vector.shape_cast %30 : vector<1x1x128xf32> to vector<1x128xf32>
    %32 = vector.broadcast %31 : vector<1x128xf32> to vector<16x128xf32>
    %33 = arith.addf %29, %32 : vector<16x128xf32>
    %34 = arith.negf %33 : vector<16x128xf32>
    %35 = math.exp %34 : vector<16x128xf32>
    %cst_21 = arith.constant 1.000000e+00 : f32
    %36 = vector.broadcast %cst_21 : f32 to vector<16x128xf32>
    %37 = arith.addf %36, %35 : vector<16x128xf32>
    %38 = arith.divf %36, %37 : vector<16x128xf32>
    %39 = arith.mulf %33, %38 : vector<16x128xf32>
    %40 = arith.addf %11, %39 : vector<16x128xf32>
    %41 = arith.truncf %40 : vector<16x128xf32> to vector<16x128xbf16>
    %c1 = arith.constant 1 : index
    %c0_22 = arith.constant 0 : index
    %c0_23 = arith.constant 0 : index
    %42 = vector.load %arg4[%c1, %c0_22, %c0_23] : memref<2x128x128xbf16, #tpu.memory_space<vmem>>, vector<1x128x128xbf16>
    %43 = vector.shape_cast %42 : vector<1x128x128xbf16> to vector<128x128xbf16>
    %cst_24 = arith.constant dense<0.000000e+00> : vector<16x128xf32>
    %44 = tpu.matmul %41, %43, %cst_24 {dimension_numbers = #tpu.dot_dimension_numbers<[1], [0], [0], [1], [0, 0, 1, 1], [], []>} : vector<16x128xbf16>, vector<128x128xbf16>, vector<16x128xf32> -> vector<16x128xf32>
    %c1_25 = arith.constant 1 : index
    %c0_26 = arith.constant 0 : index
    %c0_27 = arith.constant 0 : index
    %45 = vector.load %arg5[%c1_25, %c0_26, %c0_27] : memref<2x1x128xf32, #tpu.memory_space<vmem>>, vector<1x1x128xf32>
    %46 = vector.shape_cast %45 : vector<1x1x128xf32> to vector<1x128xf32>
    %47 = vector.broadcast %46 : vector<1x128xf32> to vector<16x128xf32>
    %48 = arith.addf %44, %47 : vector<16x128xf32>
    %49 = arith.negf %48 : vector<16x128xf32>
    %50 = math.exp %49 : vector<16x128xf32>
    %cst_28 = arith.constant 1.000000e+00 : f32
    %51 = vector.broadcast %cst_28 : f32 to vector<16x128xf32>
    %52 = arith.addf %51, %50 : vector<16x128xf32>
    %53 = arith.divf %51, %52 : vector<16x128xf32>
    %54 = arith.mulf %48, %53 : vector<16x128xf32>
    %55 = arith.truncf %54 : vector<16x128xf32> to vector<16x128xbf16>
    %c1_29 = arith.constant 1 : index
    %c0_30 = arith.constant 0 : index
    %c0_31 = arith.constant 0 : index
    %56 = vector.load %arg6[%c1_29, %c0_30, %c0_31] : memref<2x128x128xbf16, #tpu.memory_space<vmem>>, vector<1x128x128xbf16>
    %57 = vector.shape_cast %56 : vector<1x128x128xbf16> to vector<128x128xbf16>
    %cst_32 = arith.constant dense<0.000000e+00> : vector<16x128xf32>
    %58 = tpu.matmul %55, %57, %cst_32 {dimension_numbers = #tpu.dot_dimension_numbers<[1], [0], [0], [1], [0, 0, 1, 1], [], []>} : vector<16x128xbf16>, vector<128x128xbf16>, vector<16x128xf32> -> vector<16x128xf32>
    %c1_33 = arith.constant 1 : index
    %c0_34 = arith.constant 0 : index
    %c0_35 = arith.constant 0 : index
    %59 = vector.load %arg7[%c1_33, %c0_34, %c0_35] : memref<2x1x128xf32, #tpu.memory_space<vmem>>, vector<1x1x128xf32>
    %60 = vector.shape_cast %59 : vector<1x1x128xf32> to vector<1x128xf32>
    %61 = vector.broadcast %60 : vector<1x128xf32> to vector<16x128xf32>
    %62 = arith.addf %58, %61 : vector<16x128xf32>
    %63 = arith.negf %62 : vector<16x128xf32>
    %64 = math.exp %63 : vector<16x128xf32>
    %cst_36 = arith.constant 1.000000e+00 : f32
    %65 = vector.broadcast %cst_36 : f32 to vector<16x128xf32>
    %66 = arith.addf %65, %64 : vector<16x128xf32>
    %67 = arith.divf %65, %66 : vector<16x128xf32>
    %68 = arith.mulf %62, %67 : vector<16x128xf32>
    %69 = arith.addf %40, %68 : vector<16x128xf32>
    %70 = arith.truncf %69 : vector<16x128xf32> to vector<16x128xbf16>
    %c0_37 = arith.constant 0 : index
    %c0_38 = arith.constant 0 : index
    %71 = vector.load %arg8[%c0_37, %c0_38] : memref<128x128xbf16, #tpu.memory_space<vmem>>, vector<128x128xbf16>
    %cst_39 = arith.constant dense<0.000000e+00> : vector<16x128xf32>
    %72 = tpu.matmul %70, %71, %cst_39 {dimension_numbers = #tpu.dot_dimension_numbers<[1], [0], [0], [1], [0, 0, 1, 1], [], []>} : vector<16x128xbf16>, vector<128x128xbf16>, vector<16x128xf32> -> vector<16x128xf32>
    %c0_40 = arith.constant 0 : index
    %c0_41 = arith.constant 0 : index
    %73 = vector.load %arg9[%c0_40, %c0_41] : memref<1x128xf32, #tpu.memory_space<vmem>>, vector<1x128xf32>
    %74 = vector.broadcast %73 : vector<1x128xf32> to vector<16x128xf32>
    %75 = arith.addf %72, %74 : vector<16x128xf32>
    %c0_42 = arith.constant 0 : index
    %c0_43 = arith.constant 0 : index
    %76 = vector.load %arg10[%c0_42, %c0_43] : memref<16x128xf32, #tpu.memory_space<vmem>>, vector<16x128xf32>
    tpu.vector_store %arg10[%c0_42, %c0_43], %75 {strides = array<i32>} : memref<16x128xf32, #tpu.memory_space<vmem>>, vector<16x128xf32>,
    return
  }
  func.func @transform_0(%arg0: i32) -> (i32, i32) {
    %c0_i32 = arith.constant 0 : i32
    %c0_i32_0 = arith.constant 0 : i32
    return %arg0, %c0_i32 : i32, i32
  }
  func.func @transform_1(%arg0: i32) -> (i32, i32) {
    %c0_i32 = arith.constant 0 : i32
    %c0_i32_0 = arith.constant 0 : i32
    %c0_i32_1 = arith.constant 0 : i32
    return %c0_i32, %c0_i32_0 : i32, i32
  }
  func.func @transform_2(%arg0: i32) -> (i32, i32) {
    %c0_i32 = arith.constant 0 : i32
    %c0_i32_0 = arith.constant 0 : i32
    %c0_i32_1 = arith.constant 0 : i32
    return %c0_i32, %c0_i32_0 : i32, i32
  }
  func.func @transform_3(%arg0: i32) -> (i32, i32, i32) {
    %c0_i32 = arith.constant 0 : i32
    %c0_i32_0 = arith.constant 0 : i32
    %c0_i32_1 = arith.constant 0 : i32
    %c0_i32_2 = arith.constant 0 : i32
    return %c0_i32, %c0_i32_0, %c0_i32_1 : i32, i32, i32
  }
  func.func @transform_4(%arg0: i32) -> (i32, i32, i32) {
    %c0_i32 = arith.constant 0 : i32
    %c0_i32_0 = arith.constant 0 : i32
    %c0_i32_1 = arith.constant 0 : i32
    %c0_i32_2 = arith.constant 0 : i32
    return %c0_i32, %c0_i32_0, %c0_i32_1 : i32, i32, i32
  }
  func.func @transform_5(%arg0: i32) -> (i32, i32, i32) {
    %c0_i32 = arith.constant 0 : i32
    %c0_i32_0 = arith.constant 0 : i32
    %c0_i32_1 = arith.constant 0 : i32
    %c0_i32_2 = arith.constant 0 : i32
    return %c0_i32, %c0_i32_0, %c0_i32_1 : i32, i32, i32
  }
  func.func @transform_6(%arg0: i32) -> (i32, i32, i32) {
    %c0_i32 = arith.constant 0 : i32
    %c0_i32_0 = arith.constant 0 : i32
    %c0_i32_1 = arith.constant 0 : i32
    %c0_i32_2 = arith.constant 0 : i32
    return %c0_i32, %c0_i32_0, %c0_i32_1 : i32, i32, i32
  }
  func.func @transform_7(%arg0: i32) -> (i32, i32) {
    %c0_i32 = arith.constant 0 : i32
    %c0_i32_0 = arith.constant 0 : i32
    %c0_i32_1 = arith.constant 0 : i32
    return %c0_i32, %c0_i32_0 : i32, i32
  }
  func.func @transform_8(%arg0: i32) -> (i32, i32) {
    %c0_i32 = arith.constant 0 : i32
    %c0_i32_0 = arith.constant 0 : i32
    %c0_i32_1 = arith.constant 0 : i32
    return %c0_i32, %c0_i32_0 : i32, i32
  }
  func.func @transform_9(%arg0: i32) -> (i32, i32) {
    %c0_i32 = arith.constant 0 : i32
    %c0_i32_0 = arith.constant 0 : i32
    return %arg0, %c0_i32 : i32, i32
  }
}

</mosaic_0001>

<bundles_post_ra>
// kernel: tpu_custom_call.1
= control target key start
LH: loop header
LB: loop body
LE: loop exit
PB: predicated region body
PF: predicated region fallthrough
CT: control target
= control target key end

     0   :  { %14 = vsyncpa [#allocation3], 0  ;;  %s1625_s0 = inlined_call_operand.hbm [shape: bf16[16,128], index: 0, kind: input, shape index: {}]   ;;  %s1626_s1 = inlined_call_operand.hbm [shape: bf16[128,128], index: 1, kind: input, shape index: {}]   ;;  %s1627_s2 = inlined_call_operand.vmem [shape: f32[1,128], index: 2, kind: input, shape index: {}]   ;;  %s1628_s3 = inlined_call_operand.hbm [shape: bf16[2,128,128], index: 3, kind: input, shape index: {}]   ;;  %s1629_s4 = inlined_call_operand.vmem [shape: f32[2,1,128], index: 4, kind: input, shape index: {}]   ;;  %s1630_s5 = inlined_call_operand.hbm [shape: bf16[2,128,128], index: 5, kind: input, shape index: {}]   ;;  %s1631_s6 = inlined_call_operand.vmem [shape: f32[2,1,128], index: 6, kind: input, shape index: {}]   ;;  %s1632_s7 = inlined_call_operand.hbm [shape: bf16[128,128], index: 7, kind: input, shape index: {}]   ;;  %s1633_s8 = inlined_call_operand.vmem [shape: f32[1,128], index: 8, kind: input, shape index: {}]   ;;  %s1634_s9 = inlined_call_operand.hbm [shape: f32[16,128], index: 9, kind: output, shape index: {}]  }
   0x1   :  { %15 = vsyncpa [#allocation6], 0 }
   0x2   :  { %16 = vsyncpa [#allocation9], 0 }
   0x3   :  { %17 = vsyncpa [#allocation4], 0  ;;  %s1368_s30 = smov [#allocation5]   ;;  %s1369_s11 = smov [#allocation8]  }
   0x4   :  { %s35_s10 = sshll.u32 %s1368_s30, 4  ;;  %s63_s12 = sshll.u32 %s1369_s11, 4  ;;  %s36_s10 = int_to_ptr.vmem [resolvable:$true] %s35_s10  ;;  %s1430_s12 = int_to_ptr.vmem [resolvable:$true] %s63_s12 }
   0x5   :  { %s1228_s15 = scalar_lea.hbm %s1626_s1, 1024 }
   0x6   :  { %p1229_p0 = scmp.ne.s32.totalorder %s1626_s1, %s1228_s15  ;;  %p1232_p1 = scmp.lt.u32.totalorder %s1228_s15, %s1626_s1 }
   0x8   :  { %p1234_p2 = pnand %p1232_p1, %p1229_p0 }
   0xa   :  { %1237 = shalt.err (!%p1234_p2)
}
   0xb   :  { %s1238_s20 = scalar_lea.vmem %s36_s10, 1024  ;;  %p1243_p4 = scmp.lt.s32.totalorder %s36_s10, %s36_s10 }
   0xc   :  { %p1239_p3 = scmp.ne.s32.totalorder %s36_s10, %s1238_s20  ;;  %p1244_p5 = scmp.lt.s32.totalorder %s1238_s20, %s1238_s20 }
   0xe   :  { %p1245_p6 = por %p1244_p5, %p1243_p4 }
  0x10   :  { %p1246_p7 = pnand %p1245_p6, %p1239_p3 }
  0x12   :  { %1249 = shalt.err (!%p1246_p7)
}
  0x13   :  { %s1370_s21 = smov 64   ;;  %s1371_s22 = smov 4  }
  0x14   :  { %41 = dma.hbm_to_vmem [thread:$0]  %s1626_s1, 1024, %s36_s10, [#allocation6], %s1370_s21, %s1370_s21, %s1371_s22  }
  0x15   :  { %s1250_s27 = scalar_lea.hbm %s1630_s5, 2048 }
  0x16   :  { %p1251_p8 = scmp.ne.s32.totalorder %s1630_s5, %s1250_s27  ;;  %p1254_p9 = scmp.lt.u32.totalorder %s1250_s27, %s1630_s5 }
  0x18   :  { %p1256_p10 = pnand %p1254_p9, %p1251_p8 }
  0x1a   :  { %1259 = shalt.err (!%p1256_p10)
}
  0x1b   :  { %s1260_s13 = scalar_lea.vmem %s1430_s12, 2048  ;;  %p1265_p12 = scmp.lt.s32.totalorder %s1430_s12, %s1430_s12 }
  0x1c   :  { %p1261_p11 = scmp.ne.s32.totalorder %s1430_s12, %s1260_s13  ;;  %p1266_p13 = scmp.lt.s32.totalorder %s1260_s13, %s1260_s13 }
  0x1e   :  { %p1267_p0 = por %p1266_p13, %p1265_p12 }
  0x20   :  { %p1268_p1 = pnand %p1267_p0, %p1261_p11 }
  0x22   :  { %1271 = shalt.err (!%p1268_p1)
}
  0x23   :  { %69 = dma.hbm_to_vmem [thread:$0]  %s1630_s5, 2048, %s1430_s12, [#allocation9], %s1370_s21, %s1370_s21, %s1371_s22  }
  0x24   :  { %s1372_s14 = smov [#allocation2]   ;;  %s1373_s16 = smov [#allocation7]  }
  0x25   :  { %s23_s15 = sshll.u32 %s1372_s14, 4  ;;  %s49_s17 = sshll.u32 %s1373_s16, 4  ;;  %s24_s15 = int_to_ptr.vmem [resolvable:$true] %s23_s15  ;;  %s1467_s17 = int_to_ptr.vmem [resolvable:$true] %s49_s17 }
  0x26   :  { %s1272_s20 = scalar_lea.hbm %s1625_s0, 128 }
  0x27   :  { %p1273_p2 = scmp.ne.s32.totalorder %s1625_s0, %s1272_s20  ;;  %p1276_p3 = scmp.lt.u32.totalorder %s1272_s20, %s1625_s0 }
  0x29   :  { %p1278_p4 = pnand %p1276_p3, %p1273_p2 }
  0x2b   :  { %1281 = shalt.err (!%p1278_p4)
}
  0x2c   :  { %s1282_s5 = scalar_lea.vmem %s24_s15, 128  ;;  %p1287_p6 = scmp.lt.s32.totalorder %s24_s15, %s24_s15 }
  0x2d   :  { %p1283_p5 = scmp.ne.s32.totalorder %s24_s15, %s1282_s5  ;;  %p1288_p7 = scmp.lt.s32.totalorder %s1282_s5, %s1282_s5 }
  0x2f   :  { %p1289_p8 = por %p1288_p7, %p1287_p6 }
  0x31   :  { %p1290_p9 = pnand %p1289_p8, %p1283_p5 }
  0x33   :  { %1293 = shalt.err (!%p1290_p9)
}
  0x34   :  { %29 = dma.hbm_to_vmem [thread:$0]  %s1625_s0, 128, %s24_s15, [#allocation3], %s1370_s21, %s1370_s21, %s1371_s22  }
  0x35   :  { %s1294_s30 = scalar_lea.hbm %s1628_s3, 2048 }
  0x36   :  { %p1295_p10 = scmp.ne.s32.totalorder %s1628_s3, %s1294_s30  ;;  %p1298_p11 = scmp.lt.u32.totalorder %s1294_s30, %s1628_s3 }
  0x38   :  { %p1300_p12 = pnand %p1298_p11, %p1295_p10 }
  0x3a   :  { %1303 = shalt.err (!%p1300_p12)
}
  0x3b   :  { %s1304_s14 = scalar_lea.vmem %s1467_s17, 2048  ;;  %p1309_p0 = scmp.lt.s32.totalorder %s1467_s17, %s1467_s17 }
  0x3c   :  { %p1305_p13 = scmp.ne.s32.totalorder %s1467_s17, %s1304_s14  ;;  %p1310_p1 = scmp.lt.s32.totalorder %s1304_s14, %s1304_s14 }
  0x3e   :  { %p1311_p2 = por %p1310_p1, %p1309_p0 }
  0x40   :  { %p1312_p3 = pnand %p1311_p2, %p1305_p13 }
  0x42   :  { %1315 = shalt.err (!%p1312_p3)
}
  0x43   :  { %55 = dma.hbm_to_vmem [thread:$0]  %s1628_s3, 2048, %s1467_s17, [#allocation6], %s1370_s21, %s1370_s21, %s1371_s22  }
  0x44   :  { %s1374_s16 = smov [#allocation10]   ;;  %s1316_s23 = scalar_lea.hbm %s1632_s7, 1024 }
  0x45   :  { %s77_s18 = sshll.u32 %s1374_s16, 4  ;;  %p1317_p4 = scmp.ne.s32.totalorder %s1632_s7, %s1316_s23  ;;  %s78_s18 = int_to_ptr.vmem [resolvable:$true] %s77_s18 }
  0x46   :  { %p1320_p5 = scmp.lt.u32.totalorder %s1316_s23, %s1632_s7 }
  0x48   :  { %p1322_p6 = pnand %p1320_p5, %p1317_p4 }
  0x4a   :  { %1325 = shalt.err (!%p1322_p6)
}
  0x4b   :  { %s1326_s12 = scalar_lea.vmem %s78_s18, 1024  ;;  %p1331_p8 = scmp.lt.s32.totalorder %s78_s18, %s78_s18 }
  0x4c   :  { %p1327_p7 = scmp.ne.s32.totalorder %s78_s18, %s1326_s12  ;;  %p1332_p9 = scmp.lt.s32.totalorder %s1326_s12, %s1326_s12 }
  0x4e   :  { %p1333_p10 = por %p1332_p9, %p1331_p8 }
  0x50   :  { %p1334_p11 = pnand %p1333_p10, %p1327_p7 }
  0x52   :  { %1337 = shalt.err (!%p1334_p11)
}
  0x53   :  { %83 = dma.hbm_to_vmem [thread:$0]  %s1632_s7, 1024, %s78_s18, [#allocation9], %s1370_s21, %s1370_s21, %s1371_s22  }
  0x54   :  { %1360 = dma.done.wait [#allocation3], 128  }
  0x55   :  { %1361 = vsyncadd [#allocation3], 4294967168 }
  0x56   :  { %1362 = dma.done.wait [#allocation6], 3072  }
  0x57   :  { %1363 = vsyncadd [#allocation6], 4294964224 }
  0x58   :  { %1364 = dma.done.wait [#allocation9], 3072  }
  0x59   :  { %1365 = vsyncadd [#allocation9], 4294964224  ;;  %v1375_v0 = vmov 0.0   ;;  %vm1376_vm0 = vmmov 0   ;;  %v1139_v1 = vld [vmem:[#allocation5] sm:$0xff]   ;;  %v1140_v2 = vld [vmem:[#allocation5 + $0x8] sm:$0xff]  }
  0x5a   :  { %1007 = vmatprep.subr.bf16.mxu0 %v1375_v0  ;;  %1023 = vmatprep.mubr.msk.bf16.mxu0 %vm1376_vm0, %v1375_v0  ;;  %v1141_v3 = vld [vmem:[#allocation5 + $0x10] sm:$0xff]   ;;  %v1142_v4 = vld [vmem:[#allocation5 + $0x18] sm:$0xff]   ;;  %v1143_v5 = vld [vmem:[#allocation5 + $0x20] sm:$0xff]   ;;  %s1377_s1 = smov [#allocation11]  }
  0x5b   :  { %1027 = vmatprep.subr.bf16.mxu1 %v1375_v0  ;;  %1043 = vmatprep.mubr.msk.bf16.mxu1 %vm1376_vm0, %v1375_v0  ;;  %v1144_v6 = vld [vmem:[#allocation5 + $0x28] sm:$0xff]   ;;  %v1145_v7 = vld [vmem:[#allocation5 + $0x30] sm:$0xff]   ;;  %v1146_v8 = vld [vmem:[#allocation5 + $0x38] sm:$0xff]   ;;  %s872_s10 = sshll.u32 %s1377_s1, 4  ;;  %s873_s10 = int_to_ptr.vmem [resolvable:$true] %s872_s10 }
  0x5c   :  { %1008 = vmatpush3.bf16.msra.mxu0 %v1139_v1  ;;  %v1147_v9 = vld [vmem:[#allocation2] sm:$0xff]   ;;  %v1148_v10 = vld [vmem:[#allocation7] sm:$0xff]   ;;  %v1149_v11 = vld [vmem:[#allocation7 + $0x8] sm:$0xff]   ;;  %s1338_s14 = scalar_lea.vmem %s873_s10, 256  ;;  %p1343_p13 = scmp.lt.s32.totalorder %s873_s10, %s873_s10 }
  0x5d   :  { %1009 = vmatprep.subr.bf16.mxu0 %v1375_v0  ;;  %1028 = vmatpush3.bf16.msra.mxu1 %v1148_v10  ;;  %v1150_v12 = vld [vmem:[#allocation7 + $0x10] sm:$0xff]   ;;  %v1151_v13 = vld [vmem:[#allocation7 + $0x18] sm:$0xff]   ;;  %v1152_v14 = vld [vmem:[#allocation7 + $0x20] sm:$0xff]   ;;  %p1339_p12 = scmp.ne.s32.totalorder %s873_s10, %s1338_s14  ;;  %p1344_p0 = scmp.lt.s32.totalorder %s1338_s14, %s1338_s14 }
  0x5e   :  { %1029 = vmatprep.subr.bf16.mxu1 %v1375_v0  ;;  %v1153_v15 = vld [vmem:[#allocation7 + $0x28] sm:$0xff]   ;;  %v1154_v16 = vld [vmem:[#allocation7 + $0x30] sm:$0xff]   ;;  %v1155_v17 = vld [vmem:[#allocation7 + $0x38] sm:$0xff]  }
  0x5f   :  { %v886_v18 = vld [vmem:[%s1627_s2] ss:$0 sm:$0xff]  ;;  %v1156_v36 = vld [vmem:[#allocation8] sm:$0xff]   ;;  %v1157_v37 = vld [vmem:[#allocation8 + $0x8] sm:$0xff]   ;;  %p1345_p1 = por %p1344_p0, %p1343_p13 }
  0x60   :  { %1010 = vmatpush3.bf16.msra.mxu0 %v1140_v2  ;;  %v1158_v38 = vld [vmem:[#allocation8 + $0x10] sm:$0xff]   ;;  %v1159_v39 = vld [vmem:[#allocation8 + $0x18] sm:$0xff]   ;;  %v1160_v40 = vld [vmem:[#allocation8 + $0x20] sm:$0xff]  }
  0x61   :  { %1011 = vmatprep.subr.bf16.mxu0 %v1375_v0  ;;  %1030 = vmatpush3.bf16.msra.mxu1 %v1149_v11  ;;  %v1161_v41 = vld [vmem:[#allocation8 + $0x28] sm:$0xff]   ;;  %v1162_v42 = vld [vmem:[#allocation8 + $0x30] sm:$0xff]   ;;  %v1163_v43 = vld [vmem:[#allocation8 + $0x38] sm:$0xff]   ;;  %p1346_p2 = pnand %p1345_p1, %p1339_p12 }
  0x62   :  { %1031 = vmatprep.subr.bf16.mxu1 %v1375_v0  ;;  %v898_v44 = vld [vmem:[%s1629_s4] ss:$0 sm:$0xff]  ;;  %v1164_v62 = vld [vmem:[#allocation7 + $0x40] sm:$0xff]   ;;  %v1165_v63 = vld [vmem:[#allocation7 + $0x48] sm:$0xff]  }
  0x63   :  { %v1166_v1 = vld [vmem:[#allocation7 + $0x50] sm:$0xff]   ;;  %v1167_v2 = vld [vmem:[#allocation7 + $0x58] sm:$0xff]  }
  0x64   :  { %1012 = vmatpush3.bf16.msra.mxu0 %v1141_v3  ;;  %v1168_v3 = vld [vmem:[#allocation7 + $0x60] sm:$0xff]  }
  0x65   :  { %1013 = vmatprep.subr.bf16.mxu0 %v1375_v0  ;;  %1032 = vmatpush3.bf16.msra.mxu1 %v1150_v12 }
  0x66   :  { %1033 = vmatprep.subr.bf16.mxu1 %v1375_v0 }
  0x68   :  { %1014 = vmatpush3.bf16.msra.mxu0 %v1142_v4  ;;  %v1169_v4 = vld [vmem:[#allocation7 + $0x68] sm:$0xff]  }
  0x69   :  { %1015 = vmatprep.subr.bf16.mxu0 %v1375_v0  ;;  %1034 = vmatpush3.bf16.msra.mxu1 %v1151_v13 }
  0x6a   :  { %1035 = vmatprep.subr.bf16.mxu1 %v1375_v0 }
  0x6c   :  { %1016 = vmatpush3.bf16.msra.mxu0 %v1143_v5  ;;  %v1170_v5 = vld [vmem:[#allocation7 + $0x70] sm:$0xff]  }
  0x6d   :  { %1017 = vmatprep.subr.bf16.mxu0 %v1375_v0  ;;  %1036 = vmatpush3.bf16.msra.mxu1 %v1152_v14 }
  0x6e   :  { %1037 = vmatprep.subr.bf16.mxu1 %v1375_v0 }
  0x70   :  { %1018 = vmatpush3.bf16.msra.mxu0 %v1144_v6  ;;  %v1171_v6 = vld [vmem:[#allocation7 + $0x78] sm:$0xff]  }
  0x71   :  { %1019 = vmatprep.subr.bf16.mxu0 %v1375_v0  ;;  %1038 = vmatpush3.bf16.msra.mxu1 %v1153_v15 }
  0x72   :  { %1039 = vmatprep.subr.bf16.mxu1 %v1375_v0 }
  0x74   :  { %1020 = vmatpush3.bf16.msra.mxu0 %v1145_v7  ;;  %v909_v7 = vld [vmem:[%s1631_s6] ss:$0 sm:$0xff] }
  0x75   :  { %1021 = vmatprep.subr.bf16.mxu0 %v1375_v0  ;;  %1040 = vmatpush3.bf16.msra.mxu1 %v1154_v16 }
  0x76   :  { %1041 = vmatprep.subr.bf16.mxu1 %v1375_v0 }
  0x78   :  { %1022 = vmatpush3.bf16.msra.mxu0 %v1146_v8 }
  0x79   :  { %1047 = vmatprep.subr.bf16.mxu0 %v1375_v0  ;;  %1042 = vmatpush3.bf16.msra.mxu1 %v1155_v17 }
  0x7a   :  { %1067 = vmatprep.subr.bf16.mxu1 %v1375_v0 }
  0x7b   :  { %1024 = vmatmul.mubr.bf16.vlgmr.msra.gmra.mrb[0].mxu0 %v1147_v9 }
  0x7c   :  { %1063 = vmatprep.mubr.msk.bf16.mxu0 %vm1376_vm0, %v1375_v0  ;;  %1048 = vmatpush3.bf16.msra.mxu0 %v1156_v36 }
  0x7d   :  { %1049 = vmatprep.subr.bf16.mxu0 %v1375_v0 }
  0x80   :  { %1050 = vmatpush3.bf16.msra.mxu0 %v1157_v37 }
  0x81   :  { %1051 = vmatprep.subr.bf16.mxu0 %v1375_v0 }
  0x84   :  { %1052 = vmatpush3.bf16.msra.mxu0 %v1158_v38 }
  0x85   :  { %1053 = vmatprep.subr.bf16.mxu0 %v1375_v0 }
  0x88   :  { %1054 = vmatpush3.bf16.msra.mxu0 %v1159_v39 }
  0x89   :  { %1055 = vmatprep.subr.bf16.mxu0 %v1375_v0 }
  0x8c   :  { %1056 = vmatpush3.bf16.msra.mxu0 %v1160_v40 }
  0x8d   :  { %1057 = vmatprep.subr.bf16.mxu0 %v1375_v0 }
  0x90   :  { %1058 = vmatpush3.bf16.msra.mxu0 %v1161_v41 }
  0x91   :  { %1059 = vmatprep.subr.bf16.mxu0 %v1375_v0 }
  0x94   :  { %1060 = vmatpush3.bf16.msra.mxu0 %v1162_v42 }
  0x95   :  { %1061 = vmatprep.subr.bf16.mxu0 %v1375_v0 }
  0x98   :  { %1062 = vmatpush3.bf16.msra.mxu0 %v1163_v43 }
  0x99   :  { %1087 = vmatprep.subr.bf16.mxu0 %v1375_v0 }
 0x14e   :  { %v215_v19 = vpop.f32.mrb[0].mxu0 }
 0x14f   :  { %v216_v20 = vadd.f32 %v886_v18, %v215_v19  ;;  %v1025_v21 = vpop.f32.mrb[1].mxu0 }
 0x150   :  { %v218_v22 = vpop.f32.mrb[2].mxu0 }
 0x151   :  { %v896_v23 = vmul.f32 -1.442695, %v216_v20  ;;  %v219_v24 = vadd.f32 %v886_v18, %v218_v22  ;;  %v1026_v25 = vpop.f32.mrb[3].mxu0 }
 0x153   :  { %1188 = vpow2.f32 %v896_v23  ;;  %v897_v26 = vmul.f32 -1.442695, %v219_v24 }
 0x155   :  { %1190 = vpow2.f32 %v897_v26 }
 0x15d   :  { %v1189_v27 = vpop.eup %1188 }
 0x15e   :  { %v228_v28 = vadd.f32 1.0, %v1189_v27  ;;  %v1172_v27 = vld [vmem:[#allocation8 + $0x40] sm:$0xff]  }
 0x15f   :  { %v1191_v29 = vpop.eup %1190 }
 0x160   :  { %1192 = vrcp.f32 %v228_v28  ;;  %v229_v30 = vadd.f32 1.0, %v1191_v29  ;;  %v1173_v28 = vld [vmem:[#allocation8 + $0x48] sm:$0xff]   ;;  %v1174_v29 = vld [vmem:[#allocation8 + $0x50] sm:$0xff]  }
 0x162   :  { %1194 = vrcp.f32 %v229_v30  ;;  %v1175_v30 = vld [vmem:[#allocation8 + $0x58] sm:$0xff]  }
 0x16a   :  { %v1193_v31 = vpop.eup %1192 }
 0x16b   :  { %v1546_v33 = vmul.f32 %v1193_v31, %v216_v20  ;;  %v1176_v31 = vld [vmem:[#allocation8 + $0x60] sm:$0xff]  }
 0x16c   :  { %v1195_v32 = vpop.eup %1194 }
 0x16d   :  { %v1548_v34 = vmul.f32 %v1195_v32, %v219_v24  ;;  %v1177_v32 = vld [vmem:[#allocation8 + $0x68] sm:$0xff]  }
 0x16f   :  { %v236_v35 = vpack.c.bf16 %v1548_v34, %v1546_v33 }
 0x171   :  { %1044 = vmatmul.mubr.bf16.vlgmr.msra.gmra.mrb[0].mxu1 %v236_v35  ;;  %v921_v35 = vld [vmem:[%s1629_s4 + $0x1] ss:$0 sm:$0xff] }
 0x172   :  { %1083 = vmatprep.mubr.msk.bf16.mxu1 %vm1376_vm0, %v1375_v0  ;;  %1068 = vmatpush3.bf16.msra.mxu1 %v1164_v62 }
 0x173   :  { %1069 = vmatprep.subr.bf16.mxu1 %v1375_v0 }
 0x176   :  { %1070 = vmatpush3.bf16.msra.mxu1 %v1165_v63 }
 0x177   :  { %1071 = vmatprep.subr.bf16.mxu1 %v1375_v0 }
 0x17a   :  { %1072 = vmatpush3.bf16.msra.mxu1 %v1166_v1 }
 0x17b   :  { %1073 = vmatprep.subr.bf16.mxu1 %v1375_v0 }
 0x17e   :  { %1074 = vmatpush3.bf16.msra.mxu1 %v1167_v2 }
 0x17f   :  { %1075 = vmatprep.subr.bf16.mxu1 %v1375_v0 }
 0x182   :  { %1076 = vmatpush3.bf16.msra.mxu1 %v1168_v3 }
 0x183   :  { %1077 = vmatprep.subr.bf16.mxu1 %v1375_v0 }
 0x186   :  { %1078 = vmatpush3.bf16.msra.mxu1 %v1169_v4 }
 0x187   :  { %1079 = vmatprep.subr.bf16.mxu1 %v1375_v0 }
 0x18a   :  { %1080 = vmatpush3.bf16.msra.mxu1 %v1170_v5 }
 0x18b   :  { %1081 = vmatprep.subr.bf16.mxu1 %v1375_v0 }
 0x18e   :  { %1082 = vmatpush3.bf16.msra.mxu1 %v1171_v6 }
 0x18f   :  { %1107 = vmatprep.subr.bf16.mxu1 %v1375_v0 }
 0x244   :  { %v342_v45 = vpop.f32.mrb[0].mxu1 }
 0x245   :  { %v343_v46 = vadd.f32 %v898_v44, %v342_v45  ;;  %v1045_v47 = vpop.f32.mrb[1].mxu1 }
 0x246   :  { %v345_v48 = vpop.f32.mrb[2].mxu1 }
 0x247   :  { %v907_v49 = vmul.f32 -1.442695, %v343_v46  ;;  %v346_v50 = vadd.f32 %v898_v44, %v345_v48  ;;  %v1046_v51 = vpop.f32.mrb[3].mxu1 }
 0x249   :  { %1196 = vpow2.f32 %v907_v49  ;;  %v908_v52 = vmul.f32 -1.442695, %v346_v50 }
 0x24b   :  { %1198 = vpow2.f32 %v908_v52 }
 0x253   :  { %v1197_v53 = vpop.eup %1196 }
 0x254   :  { %v355_v54 = vadd.f32 1.0, %v1197_v53  ;;  %v1180_v53 = vld [vmem:[#allocation10] sm:$0xff]  }
 0x255   :  { %v1199_v55 = vpop.eup %1198 }
 0x256   :  { %1200 = vrcp.f32 %v355_v54  ;;  %v356_v56 = vadd.f32 1.0, %v1199_v55  ;;  %v1181_v54 = vld [vmem:[#allocation10 + $0x8] sm:$0xff]   ;;  %v1182_v55 = vld [vmem:[#allocation10 + $0x10] sm:$0xff]  }
 0x258   :  { %1202 = vrcp.f32 %v356_v56  ;;  %v1183_v56 = vld [vmem:[#allocation10 + $0x18] sm:$0xff]  }
 0x260   :  { %v1201_v57 = vpop.eup %1200 }
 0x261   :  { %v361_v59 = vmul.f32 %v1201_v57, %v343_v46  ;;  %v1184_v57 = vld [vmem:[#allocation10 + $0x20] sm:$0xff]  }
 0x262   :  { %v1203_v58 = vpop.eup %1202 }
 0x263   :  { %v362_v60 = vmul.f32 %v1203_v58, %v346_v50  ;;  %v1185_v58 = vld [vmem:[#allocation10 + $0x28] sm:$0xff]  }
 0x265   :  { %v363_v61 = vpack.c.bf16 %v362_v60, %v361_v59  ;;  %v1186_v59 = vld [vmem:[#allocation10 + $0x30] sm:$0xff]   ;;  %v1187_v60 = vld [vmem:[#allocation10 + $0x38] sm:$0xff]  }
 0x267   :  { %1064 = vmatmul.mubr.bf16.vlgmr.msra.gmra.mrb[4].mxu0 %v363_v61  ;;  %v933_v61 = vld [vmem:[%s1631_s6 + $0x1] ss:$0 sm:$0xff] }
 0x268   :  { %1103 = vmatprep.mubr.msk.bf16.mxu0 %vm1376_vm0, %v1375_v0  ;;  %1088 = vmatpush3.bf16.msra.mxu0 %v1172_v27 }
 0x269   :  { %1089 = vmatprep.subr.bf16.mxu0 %v1375_v0 }
 0x26c   :  { %1090 = vmatpush3.bf16.msra.mxu0 %v1173_v28 }
 0x26d   :  { %1091 = vmatprep.subr.bf16.mxu0 %v1375_v0 }
 0x270   :  { %1092 = vmatpush3.bf16.msra.mxu0 %v1174_v29 }
 0x271   :  { %1093 = vmatprep.subr.bf16.mxu0 %v1375_v0 }
 0x274   :  { %1094 = vmatpush3.bf16.msra.mxu0 %v1175_v30 }
 0x275   :  { %1095 = vmatprep.subr.bf16.mxu0 %v1375_v0 }
 0x278   :  { %1096 = vmatpush3.bf16.msra.mxu0 %v1176_v31 }
 0x279   :  { %1097 = vmatprep.subr.bf16.mxu0 %v1375_v0 }
 0x27c   :  { %1098 = vmatpush3.bf16.msra.mxu0 %v1177_v32 }
 0x27d   :  { %1099 = vmatprep.subr.bf16.mxu0 %v1375_v0 }
 0x33a   :  { %v469_v8 = vpop.f32.mrb[4].mxu0 }
 0x33b   :  { %v470_v9 = vadd.f32 %v909_v7, %v469_v8  ;;  %v1065_v10 = vpop.f32.mrb[5].mxu0 }
 0x33c   :  { %v472_v11 = vpop.f32.mrb[6].mxu0 }
 0x33d   :  { %v918_v12 = vmul.f32 -1.442695, %v470_v9  ;;  %v473_v13 = vadd.f32 %v909_v7, %v472_v11  ;;  %v1066_v14 = vpop.f32.mrb[7].mxu0 }
 0x33f   :  { %1204 = vpow2.f32 %v918_v12  ;;  %v919_v15 = vmul.f32 -1.442695, %v473_v13 }
 0x341   :  { %1206 = vpow2.f32 %v919_v15 }
 0x349   :  { %v1205_v16 = vpop.eup %1204 }
 0x34a   :  { %v482_v17 = vadd.f32 1.0, %v1205_v16 }
 0x34b   :  { %v1207_v18 = vpop.eup %1206 }
 0x34c   :  { %1208 = vrcp.f32 %v482_v17  ;;  %v483_v19 = vadd.f32 1.0, %v1207_v18  ;;  %v944_v17 = vld [vmem:[%s1633_s8] ss:$0 sm:$0xff] }
 0x34e   :  { %1210 = vrcp.f32 %v483_v19 }
 0x356   :  { %v1209_v20 = vpop.eup %1208 }
 0x357   :  { %v488_v21 = vmul.f32 %v1209_v20, %v470_v9 }
 0x358   :  { %v1211_v22 = vpop.eup %1210 }
 0x359   :  { %v489_v23 = vmul.f32 %v1211_v22, %v473_v13  ;;  %v1579_v24 = vadd.f32 %v488_v21, %v1546_v33  ;;  %v1178_v33 = vld [vmem:[#allocation8 + $0x70] sm:$0xff]  }
 0x35a   :  { %1100 = vmatpush3.bf16.msra.mxu0 %v1178_v33 }
 0x35b   :  { %v1582_v25 = vadd.f32 %v489_v23, %v1548_v34  ;;  %1101 = vmatprep.subr.bf16.mxu0 %v1375_v0  ;;  %v1179_v34 = vld [vmem:[#allocation8 + $0x78] sm:$0xff]  }
 0x35d   :  { %v492_v26 = vpack.c.bf16 %v1582_v25, %v1579_v24 }
 0x35e   :  { %1102 = vmatpush3.bf16.msra.mxu0 %v1179_v34 }
 0x35f   :  { %1084 = vmatmul.mubr.bf16.vlgmr.msra.gmra.mrb[4].mxu1 %v492_v26 }
 0x360   :  { %1123 = vmatprep.mubr.msk.bf16.mxu1 %vm1376_vm0, %v1375_v0  ;;  %1108 = vmatpush3.bf16.msra.mxu1 %v1180_v53 }
 0x361   :  { %1109 = vmatprep.subr.bf16.mxu1 %v1375_v0 }
 0x364   :  { %1110 = vmatpush3.bf16.msra.mxu1 %v1181_v54 }
 0x365   :  { %1111 = vmatprep.subr.bf16.mxu1 %v1375_v0 }
 0x368   :  { %1112 = vmatpush3.bf16.msra.mxu1 %v1182_v55 }
 0x369   :  { %1113 = vmatprep.subr.bf16.mxu1 %v1375_v0 }
 0x36c   :  { %1114 = vmatpush3.bf16.msra.mxu1 %v1183_v56 }
 0x36d   :  { %1115 = vmatprep.subr.bf16.mxu1 %v1375_v0 }
 0x370   :  { %1116 = vmatpush3.bf16.msra.mxu1 %v1184_v57 }
 0x371   :  { %1117 = vmatprep.subr.bf16.mxu1 %v1375_v0 }
 0x374   :  { %1118 = vmatpush3.bf16.msra.mxu1 %v1185_v58 }
 0x375   :  { %1119 = vmatprep.subr.bf16.mxu1 %v1375_v0 }
 0x378   :  { %1120 = vmatpush3.bf16.msra.mxu1 %v1186_v59 }
 0x379   :  { %1121 = vmatprep.subr.bf16.mxu1 %v1375_v0 }
 0x37c   :  { %1122 = vmatpush3.bf16.msra.mxu1 %v1187_v60 }
 0x432   :  { %v600_v36 = vpop.f32.mrb[4].mxu1 }
 0x433   :  { %v601_v37 = vadd.f32 %v921_v35, %v600_v36  ;;  %v1085_v38 = vpop.f32.mrb[5].mxu1 }
 0x434   :  { %v603_v39 = vpop.f32.mrb[6].mxu1 }
 0x435   :  { %v930_v40 = vmul.f32 -1.442695, %v601_v37  ;;  %v604_v41 = vadd.f32 %v921_v35, %v603_v39  ;;  %v1086_v42 = vpop.f32.mrb[7].mxu1 }
 0x437   :  { %1212 = vpow2.f32 %v930_v40  ;;  %v931_v43 = vmul.f32 -1.442695, %v604_v41 }
 0x439   :  { %1214 = vpow2.f32 %v931_v43 }
 0x441   :  { %v1213_v44 = vpop.eup %1212 }
 0x442   :  { %v613_v45 = vadd.f32 1.0, %v1213_v44 }
 0x443   :  { %v1215_v46 = vpop.eup %1214 }
 0x444   :  { %1216 = vrcp.f32 %v613_v45  ;;  %v614_v47 = vadd.f32 1.0, %v1215_v46 }
 0x446   :  { %1218 = vrcp.f32 %v614_v47 }
 0x44e   :  { %v1217_v48 = vpop.eup %1216 }
 0x44f   :  { %v619_v50 = vmul.f32 %v1217_v48, %v601_v37 }
 0x450   :  { %v1219_v49 = vpop.eup %1218 }
 0x451   :  { %v620_v51 = vmul.f32 %v1219_v49, %v604_v41 }
 0x453   :  { %v621_v52 = vpack.c.bf16 %v620_v51, %v619_v50 }
 0x455   :  { %1104 = vmatmul.mubr.bf16.vlgmr.msra.gmra.mrb[8].mxu0 %v621_v52 }
 0x528   :  { %v729_v62 = vpop.f32.mrb[8].mxu0 }
 0x529   :  { %v730_v63 = vadd.f32 %v933_v61, %v729_v62  ;;  %v1105_v1 = vpop.f32.mrb[9].mxu0 }
 0x52a   :  { %v732_v2 = vpop.f32.mrb[10].mxu0 }
 0x52b   :  { %v942_v3 = vmul.f32 -1.442695, %v730_v63  ;;  %v733_v4 = vadd.f32 %v933_v61, %v732_v2  ;;  %v1106_v5 = vpop.f32.mrb[11].mxu0 }
 0x52d   :  { %1220 = vpow2.f32 %v942_v3  ;;  %v943_v6 = vmul.f32 -1.442695, %v733_v4 }
 0x52f   :  { %1222 = vpow2.f32 %v943_v6 }
 0x537   :  { %v1221_v7 = vpop.eup %1220 }
 0x538   :  { %v742_v8 = vadd.f32 1.0, %v1221_v7 }
 0x539   :  { %v1223_v9 = vpop.eup %1222 }
 0x53a   :  { %1224 = vrcp.f32 %v742_v8  ;;  %v743_v0 = vadd.f32 1.0, %v1223_v9 }
 0x53c   :  { %1226 = vrcp.f32 %v743_v0 }
 0x544   :  { %v1225_v10 = vpop.eup %1224 }
 0x545   :  { %v748_v11 = vmul.f32 %v1225_v10, %v730_v63 }
 0x546   :  { %v1227_v12 = vpop.eup %1226 }
 0x547   :  { %v749_v13 = vmul.f32 %v1227_v12, %v733_v4  ;;  %v750_v14 = vadd.f32 %v748_v11, %v1579_v24 }
 0x549   :  { %v751_v15 = vadd.f32 %v749_v13, %v1582_v25 }
 0x54b   :  { %v752_v16 = vpack.c.bf16 %v751_v15, %v750_v14 }
 0x54d   :  { %1124 = vmatmul.mubr.bf16.vlgmr.msra.gmra.mrb[8].mxu1 %v752_v16 }
 0x620   :  { %v858_v18 = vpop.f32.mrb[8].mxu1 }
 0x621   :  { %v859_v19 = vadd.f32 %v944_v17, %v858_v18  ;;  %v1125_v20 = vpop.f32.mrb[9].mxu1 }
 0x622   :  { %v861_v21 = vpop.f32.mrb[10].mxu1 }
 0x623   :  { %865 = vst [vmem:[#allocation11] sm:$0xff] %v859_v19  ;;  %v862_v22 = vadd.f32 %v944_v17, %v861_v21  ;;  %v1126_v23 = vpop.f32.mrb[11].mxu1 }
 0x625   :  { %866 = vst [vmem:[#allocation11 + $0x8] sm:$0xff] %v862_v22 }
 0x626   :  { %1349 = shalt.err (!%p1346_p2)
}
 0x627   :  { %s1350_s15 = scalar_lea.hbm %s1634_s9, 256 }
 0x628   :  { %p1351_p3 = scmp.ne.s32.totalorder %s1634_s9, %s1350_s15  ;;  %p1354_p4 = scmp.lt.u32.totalorder %s1350_s15, %s1634_s9 }
 0x62a   :  { %p1356_p5 = pnand %p1354_p4, %p1351_p3 }
 0x62c   :  { %1359 = shalt.err (!%p1356_p5)
}
 0x62d   :  { %s1378_s23 = smov 128   ;;  %s1379_s24 = smov 8  }
 0x62e   :  { %878 = dma.vmem_to_hbm [thread:$0]  %s873_s10, 256, %s1634_s9, [#allocation4], %s1378_s23, %s1378_s23, %s1379_s24  }
 0x62f   :  { %1366 = dma.done.wait [#allocation4], 256  }
 0x630   :  { %1367 = vsyncadd [#allocation4], 4294967040 }
 0x631   :  { %882 = vsyncpa [#allocation3], 1 }
 0x632   :  { %883 = vsyncpa [#allocation6], 1 }
 0x633   :  { %884 = vsyncpa [#allocation9], 1 }
 0x634   :  { %885 = vsyncpa [#allocation4], 1 }

// kernel: tpu_custom_call.1
= control target key start
LH: loop header
LB: loop body
LE: loop exit
PB: predicated region body
PF: predicated region fallthrough
CT: control target
= control target key end

     0   :  { %14 = vsyncpa [#allocation3], 0  ;;  %s1625_s0 = inlined_call_operand.hbm [shape: bf16[16,128], index: 0, kind: input, shape index: {}]   ;;  %s1626_s1 = inlined_call_operand.hbm [shape: bf16[128,128], index: 1, kind: input, shape index: {}]   ;;  %s1627_s2 = inlined_call_operand.vmem [shape: f32[1,128], index: 2, kind: input, shape index: {}]   ;;  %s1628_s3 = inlined_call_operand.hbm [shape: bf16[2,128,128], index: 3, kind: input, shape index: {}]   ;;  %s1629_s4 = inlined_call_operand.vmem [shape: f32[2,1,128], index: 4, kind: input, shape index: {}]   ;;  %s1630_s5 = inlined_call_operand.hbm [shape: bf16[2,128,128], index: 5, kind: input, shape index: {}]   ;;  %s1631_s6 = inlined_call_operand.vmem [shape: f32[2,1,128], index: 6, kind: input, shape index: {}]   ;;  %s1632_s7 = inlined_call_operand.hbm [shape: bf16[128,128], index: 7, kind: input, shape index: {}]   ;;  %s1633_s8 = inlined_call_operand.vmem [shape: f32[1,128], index: 8, kind: input, shape index: {}]   ;;  %s1634_s9 = inlined_call_operand.hbm [shape: f32[16,128], index: 9, kind: output, shape index: {}]  }
   0x1   :  { %15 = vsyncpa [#allocation6], 0 }
   0x2   :  { %16 = vsyncpa [#allocation9], 0 }
   0x3   :  { %17 = vsyncpa [#allocation4], 0  ;;  %s1368_s30 = smov [#allocation5]   ;;  %s1369_s11 = smov [#allocation8]  }
   0x4   :  { %s35_s10 = sshll.u32 %s1368_s30, 4  ;;  %s63_s12 = sshll.u32 %s1369_s11, 4  ;;  %s36_s10 = int_to_ptr.vmem [resolvable:$true] %s35_s10  ;;  %s1430_s12 = int_to_ptr.vmem [resolvable:$true] %s63_s12 }
   0x5   :  { %s1228_s15 = scalar_lea.hbm %s1626_s1, 1024 }
   0x6   :  { %p1229_p0 = scmp.ne.s32.totalorder %s1626_s1, %s1228_s15  ;;  %p1232_p1 = scmp.lt.u32.totalorder %s1228_s15, %s1626_s1 }
   0x8   :  { %p1234_p2 = pnand %p1232_p1, %p1229_p0 }
   0xa   :  { %1237 = shalt.err (!%p1234_p2)
}
   0xb   :  { %s1238_s20 = scalar_lea.vmem %s36_s10, 1024  ;;  %p1243_p4 = scmp.lt.s32.totalorder %s36_s10, %s36_s10 }
   0xc   :  { %p1239_p3 = scmp.ne.s32.totalorder %s36_s10, %s1238_s20  ;;  %p1244_p5 = scmp.lt.s32.totalorder %s1238_s20, %s1238_s20 }
   0xe   :  { %p1245_p6 = por %p1244_p5, %p1243_p4 }
  0x10   :  { %p1246_p7 = pnand %p1245_p6, %p1239_p3 }
  0x12   :  { %1249 = shalt.err (!%p1246_p7)
}
  0x13   :  { %s1370_s21 = smov 64   ;;  %s1371_s22 = smov 4  }
  0x14   :  { %41 = dma.hbm_to_vmem [thread:$0]  %s1626_s1, 1024, %s36_s10, [#allocation6], %s1370_s21, %s1370_s21, %s1371_s22  }
  0x15   :  { %s1250_s27 = scalar_lea.hbm %s1630_s5, 2048 }
  0x16   :  { %p1251_p8 = scmp.ne.s32.totalorder %s1630_s5, %s1250_s27  ;;  %p1254_p9 = scmp.lt.u32.totalorder %s1250_s27, %s1630_s5 }
  0x18   :  { %p1256_p10 = pnand %p1254_p9, %p1251_p8 }
  0x1a   :  { %1259 = shalt.err (!%p1256_p10)
}
  0x1b   :  { %s1260_s13 = scalar_lea.vmem %s1430_s12, 2048  ;;  %p1265_p12 = scmp.lt.s32.totalorder %s1430_s12, %s1430_s12 }
  0x1c   :  { %p1261_p11 = scmp.ne.s32.totalorder %s1430_s12, %s1260_s13  ;;  %p1266_p13 = scmp.lt.s32.totalorder %s1260_s13, %s1260_s13 }
  0x1e   :  { %p1267_p0 = por %p1266_p13, %p1265_p12 }
  0x20   :  { %p1268_p1 = pnand %p1267_p0, %p1261_p11 }
  0x22   :  { %1271 = shalt.err (!%p1268_p1)
}
  0x23   :  { %69 = dma.hbm_to_vmem [thread:$0]  %s1630_s5, 2048, %s1430_s12, [#allocation9], %s1370_s21, %s1370_s21, %s1371_s22  }
  0x24   :  { %s1372_s14 = smov [#allocation2]   ;;  %s1373_s16 = smov [#allocation7]  }
  0x25   :  { %s23_s15 = sshll.u32 %s1372_s14, 4  ;;  %s49_s17 = sshll.u32 %s1373_s16, 4  ;;  %s24_s15 = int_to_ptr.vmem [resolvable:$true] %s23_s15  ;;  %s1467_s17 = int_to_ptr.vmem [resolvable:$true] %s49_s17 }
  0x26   :  { %s1272_s20 = scalar_lea.hbm %s1625_s0, 128 }
  0x27   :  { %p1273_p2 = scmp.ne.s32.totalorder %s1625_s0, %s1272_s20  ;;  %p1276_p3 = scmp.lt.u32.totalorder %s1272_s20, %s1625_s0 }
  0x29   :  { %p1278_p4 = pnand %p1276_p3, %p1273_p2 }
  0x2b   :  { %1281 = shalt.err (!%p1278_p4)
}
  0x2c   :  { %s1282_s5 = scalar_lea.vmem %s24_s15, 128  ;;  %p1287_p6 = scmp.lt.s32.totalorder %s24_s15, %s24_s15 }
  0x2d   :  { %p1283_p5 = scmp.ne.s32.totalorder %s24_s15, %s1282_s5  ;;  %p1288_p7 = scmp.lt.s32.totalorder %s1282_s5, %s1282_s5 }
  0x2f   :  { %p1289_p8 = por %p1288_p7, %p1287_p6 }
  0x31   :  { %p1290_p9 = pnand %p1289_p8, %p1283_p5 }
  0x33   :  { %1293 = shalt.err (!%p1290_p9)
}
  0x34   :  { %29 = dma.hbm_to_vmem [thread:$0]  %s1625_s0, 128, %s24_s15, [#allocation3], %s1370_s21, %s1370_s21, %s1371_s22  }
  0x35   :  { %s1294_s30 = scalar_lea.hbm %s1628_s3, 2048 }
  0x36   :  { %p1295_p10 = scmp.ne.s32.totalorder %s1628_s3, %s1294_s30  ;;  %p1298_p11 = scmp.lt.u32.totalorder %s1294_s30, %s1628_s3 }
  0x38   :  { %p1300_p12 = pnand %p1298_p11, %p1295_p10 }
  0x3a   :  { %1303 = shalt.err (!%p1300_p12)
}
  0x3b   :  { %s1304_s14 = scalar_lea.vmem %s1467_s17, 2048  ;;  %p1309_p0 = scmp.lt.s32.totalorder %s1467_s17, %s1467_s17 }
  0x3c   :  { %p1305_p13 = scmp.ne.s32.totalorder %s1467_s17, %s1304_s14  ;;  %p1310_p1 = scmp.lt.s32.totalorder %s1304_s14, %s1304_s14 }
  0x3e   :  { %p1311_p2 = por %p1310_p1, %p1309_p0 }
  0x40   :  { %p1312_p3 = pnand %p1311_p2, %p1305_p13 }
  0x42   :  { %1315 = shalt.err (!%p1312_p3)
}
  0x43   :  { %55 = dma.hbm_to_vmem [thread:$0]  %s1628_s3, 2048, %s1467_s17, [#allocation6], %s1370_s21, %s1370_s21, %s1371_s22  }
  0x44   :  { %s1374_s16 = smov [#allocation10]   ;;  %s1316_s23 = scalar_lea.hbm %s1632_s7, 1024 }
  0x45   :  { %s77_s18 = sshll.u32 %s1374_s16, 4  ;;  %p1317_p4 = scmp.ne.s32.totalorder %s1632_s7, %s1316_s23  ;;  %s78_s18 = int_to_ptr.vmem [resolvable:$true] %s77_s18 }
  0x46   :  { %p1320_p5 = scmp.lt.u32.totalorder %s1316_s23, %s1632_s7 }
  0x48   :  { %p1322_p6 = pnand %p1320_p5, %p1317_p4 }
  0x4a   :  { %1325 = shalt.err (!%p1322_p6)
}
  0x4b   :  { %s1326_s12 = scalar_lea.vmem %s78_s18, 1024  ;;  %p1331_p8 = scmp.lt.s32.totalorder %s78_s18, %s78_s18 }
  0x4c   :  { %p1327_p7 = scmp.ne.s32.totalorder %s78_s18, %s1326_s12  ;;  %p1332_p9 = scmp.lt.s32.totalorder %s1326_s12, %s1326_s12 }
  0x4e   :  { %p1333_p10 = por %p1332_p9, %p1331_p8 }
  0x50   :  { %p1334_p11 = pnand %p1333_p10, %p1327_p7 }
  0x52   :  { %1337 = shalt.err (!%p1334_p11)
}
  0x53   :  { %83 = dma.hbm_to_vmem [thread:$0]  %s1632_s7, 1024, %s78_s18, [#allocation9], %s1370_s21, %s1370_s21, %s1371_s22  }
  0x54   :  { %1360 = dma.done.wait [#allocation3], 128  }
  0x55   :  { %1361 = vsyncadd [#allocation3], 4294967168 }
  0x56   :  { %1362 = dma.done.wait [#allocation6], 3072  }
  0x57   :  { %1363 = vsyncadd [#allocation6], 4294964224 }
  0x58   :  { %1364 = dma.done.wait [#allocation9], 3072  }
  0x59   :  { %1365 = vsyncadd [#allocation9], 4294964224  ;;  %v1375_v0 = vmov 0.0   ;;  %vm1376_vm0 = vmmov 0   ;;  %v1139_v1 = vld [vmem:[#allocation5] sm:$0xff]   ;;  %v1140_v2 = vld [vmem:[#allocation5 + $0x8] sm:$0xff]  }
  0x5a   :  { %1007 = vmatprep.subr.bf16.mxu0 %v1375_v0  ;;  %1023 = vmatprep.mubr.msk.bf16.mxu0 %vm1376_vm0, %v1375_v0  ;;  %v1141_v3 = vld [vmem:[#allocation5 + $0x10] sm:$0xff]   ;;  %v1142_v4 = vld [vmem:[#allocation5 + $0x18] sm:$0xff]   ;;  %v1143_v5 = vld [vmem:[#allocation5 + $0x20] sm:$0xff]   ;;  %s1377_s1 = smov [#allocation11]  }
  0x5b   :  { %1027 = vmatprep.subr.bf16.mxu1 %v1375_v0  ;;  %1043 = vmatprep.mubr.msk.bf16.mxu1 %vm1376_vm0, %v1375_v0  ;;  %v1144_v6 = vld [vmem:[#allocation5 + $0x28] sm:$0xff]   ;;  %v1145_v7 = vld [vmem:[#allocation5 + $0x30] sm:$0xff]   ;;  %v1146_v8 = vld [vmem:[#allocation5 + $0x38] sm:$0xff]   ;;  %s872_s10 = sshll.u32 %s1377_s1, 4  ;;  %s873_s10 = int_to_ptr.vmem [resolvable:$true] %s872_s10 }
  0x5c   :  { %1008 = vmatpush3.bf16.msra.mxu0 %v1139_v1  ;;  %v1147_v9 = vld [vmem:[#allocation2] sm:$0xff]   ;;  %v1148_v10 = vld [vmem:[#allocation7] sm:$0xff]   ;;  %v1149_v11 = vld [vmem:[#allocation7 + $0x8] sm:$0xff]   ;;  %s1338_s14 = scalar_lea.vmem %s873_s10, 256  ;;  %p1343_p13 = scmp.lt.s32.totalorder %s873_s10, %s873_s10 }
  0x5d   :  { %1009 = vmatprep.subr.bf16.mxu0 %v1375_v0  ;;  %1028 = vmatpush3.bf16.msra.mxu1 %v1148_v10  ;;  %v1150_v12 = vld [vmem:[#allocation7 + $0x10] sm:$0xff]   ;;  %v1151_v13 = vld [vmem:[#allocation7 + $0x18] sm:$0xff]   ;;  %v1152_v14 = vld [vmem:[#allocation7 + $0x20] sm:$0xff]   ;;  %p1339_p12 = scmp.ne.s32.totalorder %s873_s10, %s1338_s14  ;;  %p1344_p0 = scmp.lt.s32.totalorder %s1338_s14, %s1338_s14 }
  0x5e   :  { %1029 = vmatprep.subr.bf16.mxu1 %v1375_v0  ;;  %v1153_v15 = vld [vmem:[#allocation7 + $0x28] sm:$0xff]   ;;  %v1154_v16 = vld [vmem:[#allocation7 + $0x30] sm:$0xff]   ;;  %v1155_v17 = vld [vmem:[#allocation7 + $0x38] sm:$0xff]  }
  0x5f   :  { %v886_v18 = vld [vmem:[%s1627_s2] ss:$0 sm:$0xff]  ;;  %v1156_v36 = vld [vmem:[#allocation8] sm:$0xff]   ;;  %v1157_v37 = vld [vmem:[#allocation8 + $0x8] sm:$0xff]   ;;  %p1345_p1 = por %p1344_p0, %p1343_p13 }
  0x60   :  { %1010 = vmatpush3.bf16.msra.mxu0 %v1140_v2  ;;  %v1158_v38 = vld [vmem:[#allocation8 + $0x10] sm:$0xff]   ;;  %v1159_v39 = vld [vmem:[#allocation8 + $0x18] sm:$0xff]   ;;  %v1160_v40 = vld [vmem:[#allocation8 + $0x20] sm:$0xff]  }
  0x61   :  { %1011 = vmatprep.subr.bf16.mxu0 %v1375_v0  ;;  %1030 = vmatpush3.bf16.msra.mxu1 %v1149_v11  ;;  %v1161_v41 = vld [vmem:[#allocation8 + $0x28] sm:$0xff]   ;;  %v1162_v42 = vld [vmem:[#allocation8 + $0x30] sm:$0xff]   ;;  %v1163_v43 = vld [vmem:[#allocation8 + $0x38] sm:$0xff]   ;;  %p1346_p2 = pnand %p1345_p1, %p1339_p12 }
  0x62   :  { %1031 = vmatprep.subr.bf16.mxu1 %v1375_v0  ;;  %v898_v44 = vld [vmem:[%s1629_s4] ss:$0 sm:$0xff]  ;;  %v1164_v62 = vld [vmem:[#allocation7 + $0x40] sm:$0xff]   ;;  %v1165_v63 = vld [vmem:[#allocation7 + $0x48] sm:$0xff]  }
  0x63   :  { %v1166_v1 = vld [vmem:[#allocation7 + $0x50] sm:$0xff]   ;;  %v1167_v2 = vld [vmem:[#allocation7 + $0x58] sm:$0xff]  }
  0x64   :  { %1012 = vmatpush3.bf16.msra.mxu0 %v1141_v3  ;;  %v1168_v3 = vld [vmem:[#allocation7 + $0x60] sm:$0xff]  }
  0x65   :  { %1013 = vmatprep.subr.bf16.mxu0 %v1375_v0  ;;  %1032 = vmatpush3.bf16.msra.mxu1 %v1150_v12 }
  0x66   :  { %1033 = vmatprep.subr.bf16.mxu1 %v1375_v0 }
  0x68   :  { %1014 = vmatpush3.bf16.msra.mxu0 %v1142_v4  ;;  %v1169_v4 = vld [vmem:[#allocation7 + $0x68] sm:$0xff]  }
  0x69   :  { %1015 = vmatprep.subr.bf16.mxu0 %v1375_v0  ;;  %1034 = vmatpush3.bf16.msra.mxu1 %v1151_v13 }
  0x6a   :  { %1035 = vmatprep.subr.bf16.mxu1 %v1375_v0 }
  0x6c   :  { %1016 = vmatpush3.bf16.msra.mxu0 %v1143_v5  ;;  %v1170_v5 = vld [vmem:[#allocation7 + $0x70] sm:$0xff]  }
  0x6d   :  { %1017 = vmatprep.subr.bf16.mxu0 %v1375_v0  ;;  %1036 = vmatpush3.bf16.msra.mxu1 %v1152_v14 }
  0x6e   :  { %1037 = vmatprep.subr.bf16.mxu1 %v1375_v0 }
  0x70   :  { %1018 = vmatpush3.bf16.msra.mxu0 %v1144_v6  ;;  %v1171_v6 = vld [vmem:[#allocation7 + $0x78] sm:$0xff]  }
  0x71   :  { %1019 = vmatprep.subr.bf16.mxu0 %v1375_v0  ;;  %1038 = vmatpush3.bf16.msra.mxu1 %v1153_v15 }
  0x72   :  { %1039 = vmatprep.subr.bf16.mxu1 %v1375_v0 }
  0x74   :  { %1020 = vmatpush3.bf16.msra.mxu0 %v1145_v7  ;;  %v909_v7 = vld [vmem:[%s1631_s6] ss:$0 sm:$0xff] }
  0x75   :  { %1021 = vmatprep.subr.bf16.mxu0 %v1375_v0  ;;  %1040 = vmatpush3.bf16.msra.mxu1 %v1154_v16 }
  0x76   :  { %1041 = vmatprep.subr.bf16.mxu1 %v1375_v0 }
  0x78   :  { %1022 = vmatpush3.bf16.msra.mxu0 %v1146_v8 }
  0x79   :  { %1047 = vmatprep.subr.bf16.mxu0 %v1375_v0  ;;  %1042 = vmatpush3.bf16.msra.mxu1 %v1155_v17 }
  0x7a   :  { %1067 = vmatprep.subr.bf16.mxu1 %v1375_v0 }
  0x7b   :  { %1024 = vmatmul.mubr.bf16.vlgmr.msra.gmra.mrb[0].mxu0 %v1147_v9 }
  0x7c   :  { %1063 = vmatprep.mubr.msk.bf16.mxu0 %vm1376_vm0, %v1375_v0  ;;  %1048 = vmatpush3.bf16.msra.mxu0 %v1156_v36 }
  0x7d   :  { %1049 = vmatprep.subr.bf16.mxu0 %v1375_v0 }
  0x80   :  { %1050 = vmatpush3.bf16.msra.mxu0 %v1157_v37 }
  0x81   :  { %1051 = vmatprep.subr.bf16.mxu0 %v1375_v0 }
  0x84   :  { %1052 = vmatpush3.bf16.msra.mxu0 %v1158_v38 }
  0x85   :  { %1053 = vmatprep.subr.bf16.mxu0 %v1375_v0 }
  0x88   :  { %1054 = vmatpush3.bf16.msra.mxu0 %v1159_v39 }
  0x89   :  { %1055 = vmatprep.subr.bf16.mxu0 %v1375_v0 }
  0x8c   :  { %1056 = vmatpush3.bf16.msra.mxu0 %v1160_v40 }
  0x8d   :  { %1057 = vmatprep.subr.bf16.mxu0 %v1375_v0 }
  0x90   :  { %1058 = vmatpush3.bf16.msra.mxu0 %v1161_v41 }
  0x91   :  { %1059 = vmatprep.subr.bf16.mxu0 %v1375_v0 }
  0x94   :  { %1060 = vmatpush3.bf16.msra.mxu0 %v1162_v42 }
  0x95   :  { %1061 = vmatprep.subr.bf16.mxu0 %v1375_v0 }
  0x98   :  { %1062 = vmatpush3.bf16.msra.mxu0 %v1163_v43 }
  0x99   :  { %1087 = vmatprep.subr.bf16.mxu0 %v1375_v0 }
 0x14e   :  { %v215_v19 = vpop.f32.mrb[0].mxu0 }
 0x14f   :  { %v216_v20 = vadd.f32 %v886_v18, %v215_v19  ;;  %v1025_v21 = vpop.f32.mrb[1].mxu0 }
 0x150   :  { %v218_v22 = vpop.f32.mrb[2].mxu0 }
 0x151   :  { %v896_v23 = vmul.f32 -1.442695, %v216_v20  ;;  %v219_v24 = vadd.f32 %v886_v18, %v218_v22  ;;  %v1026_v25 = vpop.f32.mrb[3].mxu0 }
 0x153   :  { %1188 = vpow2.f32 %v896_v23  ;;  %v897_v26 = vmul.f32 -1.442695, %v219_v24 }
 0x155   :  { %1190 = vpow2.f32 %v897_v26 }
 0x15d   :  { %v1189_v27 = vpop.eup %1188 }
 0x15e   :  { %v228_v28 = vadd.f32 1.0, %v1189_v27  ;;  %v1172_v27 = vld [vmem:[#allocation8 + $0x40] sm:$0xff]  }
 0x15f   :  { %v1191_v29 = vpop.eup %1190 }
 0x160   :  { %1192 = vrcp.f32 %v228_v28  ;;  %v229_v30 = vadd.f32 1.0, %v1191_v29  ;;  %v1173_v28 = vld [vmem:[#allocation8 + $0x48] sm:$0xff]   ;;  %v1174_v29 = vld [vmem:[#allocation8 + $0x50] sm:$0xff]  }
 0x162   :  { %1194 = vrcp.f32 %v229_v30  ;;  %v1175_v30 = vld [vmem:[#allocation8 + $0x58] sm:$0xff]  }
 0x16a   :  { %v1193_v31 = vpop.eup %1192 }
 0x16b   :  { %v1546_v33 = vmul.f32 %v1193_v31, %v216_v20  ;;  %v1176_v31 = vld [vmem:[#allocation8 + $0x60] sm:$0xff]  }
 0x16c   :  { %v1195_v32 = vpop.eup %1194 }
 0x16d   :  { %v1548_v34 = vmul.f32 %v1195_v32, %v219_v24  ;;  %v1177_v32 = vld [vmem:[#allocation8 + $0x68] sm:$0xff]  }
 0x16f   :  { %v236_v35 = vpack.c.bf16 %v1548_v34, %v1546_v33 }
 0x171   :  { %1044 = vmatmul.mubr.bf16.vlgmr.msra.gmra.mrb[0].mxu1 %v236_v35  ;;  %v921_v35 = vld [vmem:[%s1629_s4 + $0x1] ss:$0 sm:$0xff] }
 0x172   :  { %1083 = vmatprep.mubr.msk.bf16.mxu1 %vm1376_vm0, %v1375_v0  ;;  %1068 = vmatpush3.bf16.msra.mxu1 %v1164_v62 }
 0x173   :  { %1069 = vmatprep.subr.bf16.mxu1 %v1375_v0 }
 0x176   :  { %1070 = vmatpush3.bf16.msra.mxu1 %v1165_v63 }
 0x177   :  { %1071 = vmatprep.subr.bf16.mxu1 %v1375_v0 }
 0x17a   :  { %1072 = vmatpush3.bf16.msra.mxu1 %v1166_v1 }
 0x17b   :  { %1073 = vmatprep.subr.bf16.mxu1 %v1375_v0 }
 0x17e   :  { %1074 = vmatpush3.bf16.msra.mxu1 %v1167_v2 }
 0x17f   :  { %1075 = vmatprep.subr.bf16.mxu1 %v1375_v0 }
 0x182   :  { %1076 = vmatpush3.bf16.msra.mxu1 %v1168_v3 }
 0x183   :  { %1077 = vmatprep.subr.bf16.mxu1 %v1375_v0 }
 0x186   :  { %1078 = vmatpush3.bf16.msra.mxu1 %v1169_v4 }
 0x187   :  { %1079 = vmatprep.subr.bf16.mxu1 %v1375_v0 }
 0x18a   :  { %1080 = vmatpush3.bf16.msra.mxu1 %v1170_v5 }
 0x18b   :  { %1081 = vmatprep.subr.bf16.mxu1 %v1375_v0 }
 0x18e   :  { %1082 = vmatpush3.bf16.msra.mxu1 %v1171_v6 }
 0x18f   :  { %1107 = vmatprep.subr.bf16.mxu1 %v1375_v0 }
 0x244   :  { %v342_v45 = vpop.f32.mrb[0].mxu1 }
 0x245   :  { %v343_v46 = vadd.f32 %v898_v44, %v342_v45  ;;  %v1045_v47 = vpop.f32.mrb[1].mxu1 }
 0x246   :  { %v345_v48 = vpop.f32.mrb[2].mxu1 }
 0x247   :  { %v907_v49 = vmul.f32 -1.442695, %v343_v46  ;;  %v346_v50 = vadd.f32 %v898_v44, %v345_v48  ;;  %v1046_v51 = vpop.f32.mrb[3].mxu1 }
 0x249   :  { %1196 = vpow2.f32 %v907_v49  ;;  %v908_v52 = vmul.f32 -1.442695, %v346_v50 }
 0x24b   :  { %1198 = vpow2.f32 %v908_v52 }
 0x253   :  { %v1197_v53 = vpop.eup %1196 }
 0x254   :  { %v355_v54 = vadd.f32 1.0, %v1197_v53  ;;  %v1180_v53 = vld [vmem:[#allocation10] sm:$0xff]  }
 0x255   :  { %v1199_v55 = vpop.eup %1198 }
 0x256   :  { %1200 = vrcp.f32 %v355_v54  ;;  %v356_v56 = vadd.f32 1.0, %v1199_v55  ;;  %v1181_v54 = vld [vmem:[#allocation10 + $0x8] sm:$0xff]   ;;  %v1182_v55 = vld [vmem:[#allocation10 + $0x10] sm:$0xff]  }
 0x258   :  { %1202 = vrcp.f32 %v356_v56  ;;  %v1183_v56 = vld [vmem:[#allocation10 + $0x18] sm:$0xff]  }
 0x260   :  { %v1201_v57 = vpop.eup %1200 }
 0x261   :  { %v361_v59 = vmul.f32 %v1201_v57, %v343_v46  ;;  %v1184_v57 = vld [vmem:[#allocation10 + $0x20] sm:$0xff]  }
 0x262   :  { %v1203_v58 = vpop.eup %1202 }
 0x263   :  { %v362_v60 = vmul.f32 %v1203_v58, %v346_v50  ;;  %v1185_v58 = vld [vmem:[#allocation10 + $0x28] sm:$0xff]  }
 0x265   :  { %v363_v61 = vpack.c.bf16 %v362_v60, %v361_v59  ;;  %v1186_v59 = vld [vmem:[#allocation10 + $0x30] sm:$0xff]   ;;  %v1187_v60 = vld [vmem:[#allocation10 + $0x38] sm:$0xff]  }
 0x267   :  { %1064 = vmatmul.mubr.bf16.vlgmr.msra.gmra.mrb[4].mxu0 %v363_v61  ;;  %v933_v61 = vld [vmem:[%s1631_s6 + $0x1] ss:$0 sm:$0xff] }
 0x268   :  { %1103 = vmatprep.mubr.msk.bf16.mxu0 %vm1376_vm0, %v1375_v0  ;;  %1088 = vmatpush3.bf16.msra.mxu0 %v1172_v27 }
 0x269   :  { %1089 = vmatprep.subr.bf16.mxu0 %v1375_v0 }
 0x26c   :  { %1090 = vmatpush3.bf16.msra.mxu0 %v1173_v28 }
 0x26d   :  { %1091 = vmatprep.subr.bf16.mxu0 %v1375_v0 }
 0x270   :  { %1092 = vmatpush3.bf16.msra.mxu0 %v1174_v29 }
 0x271   :  { %1093 = vmatprep.subr.bf16.mxu0 %v1375_v0 }
 0x274   :  { %1094 = vmatpush3.bf16.msra.mxu0 %v1175_v30 }
 0x275   :  { %1095 = vmatprep.subr.bf16.mxu0 %v1375_v0 }
 0x278   :  { %1096 = vmatpush3.bf16.msra.mxu0 %v1176_v31 }
 0x279   :  { %1097 = vmatprep.subr.bf16.mxu0 %v1375_v0 }
 0x27c   :  { %1098 = vmatpush3.bf16.msra.mxu0 %v1177_v32 }
 0x27d   :  { %1099 = vmatprep.subr.bf16.mxu0 %v1375_v0 }
 0x33a   :  { %v469_v8 = vpop.f32.mrb[4].mxu0 }
 0x33b   :  { %v470_v9 = vadd.f32 %v909_v7, %v469_v8  ;;  %v1065_v10 = vpop.f32.mrb[5].mxu0 }
 0x33c   :  { %v472_v11 = vpop.f32.mrb[6].mxu0 }
 0x33d   :  { %v918_v12 = vmul.f32 -1.442695, %v470_v9  ;;  %v473_v13 = vadd.f32 %v909_v7, %v472_v11  ;;  %v1066_v14 = vpop.f32.mrb[7].mxu0 }
 0x33f   :  { %1204 = vpow2.f32 %v918_v12  ;;  %v919_v15 = vmul.f32 -1.442695, %v473_v13 }
 0x341   :  { %1206 = vpow2.f32 %v919_v15 }
 0x349   :  { %v1205_v16 = vpop.eup %1204 }
 0x34a   :  { %v482_v17 = vadd.f32 1.0, %v1205_v16 }
 0x34b   :  { %v1207_v18 = vpop.eup %1206 }
 0x34c   :  { %1208 = vrcp.f32 %v482_v17  ;;  %v483_v19 = vadd.f32 1.0, %v1207_v18  ;;  %v944_v17 = vld [vmem:[%s1633_s8] ss:$0 sm:$0xff] }
 0x34e   :  { %1210 = vrcp.f32 %v483_v19 }
 0x356   :  { %v1209_v20 = vpop.eup %1208 }
 0x357   :  { %v488_v21 = vmul.f32 %v1209_v20, %v470_v9 }
 0x358   :  { %v1211_v22 = vpop.eup %1210 }
 0x359   :  { %v489_v23 = vmul.f32 %v1211_v22, %v473_v13  ;;  %v1579_v24 = vadd.f32 %v488_v21, %v1546_v33  ;;  %v1178_v33 = vld [vmem:[#allocation8 + $0x70] sm:$0xff]  }
 0x35a   :  { %1100 = vmatpush3.bf16.msra.mxu0 %v1178_v33 }
 0x35b   :  { %v1582_v25 = vadd.f32 %v489_v23, %v1548_v34  ;;  %1101 = vmatprep.subr.bf16.mxu0 %v1375_v0  ;;  %v1179_v34 = vld [vmem:[#allocation8 + $0x78] sm:$0xff]  }
 0x35d   :  { %v492_v26 = vpack.c.bf16 %v1582_v25, %v1579_v24 }
 0x35e   :  { %1102 = vmatpush3.bf16.msra.mxu0 %v1179_v34 }
 0x35f   :  { %1084 = vmatmul.mubr.bf16.vlgmr.msra.gmra.mrb[4].mxu1 %v492_v26 }
 0x360   :  { %1123 = vmatprep.mubr.msk.bf16.mxu1 %vm1376_vm0, %v1375_v0  ;;  %1108 = vmatpush3.bf16.msra.mxu1 %v1180_v53 }
 0x361   :  { %1109 = vmatprep.subr.bf16.mxu1 %v1375_v0 }
 0x364   :  { %1110 = vmatpush3.bf16.msra.mxu1 %v1181_v54 }
 0x365   :  { %1111 = vmatprep.subr.bf16.mxu1 %v1375_v0 }
 0x368   :  { %1112 = vmatpush3.bf16.msra.mxu1 %v1182_v55 }
 0x369   :  { %1113 = vmatprep.subr.bf16.mxu1 %v1375_v0 }
 0x36c   :  { %1114 = vmatpush3.bf16.msra.mxu1 %v1183_v56 }
 0x36d   :  { %1115 = vmatprep.subr.bf16.mxu1 %v1375_v0 }
 0x370   :  { %1116 = vmatpush3.bf16.msra.mxu1 %v1184_v57 }
 0x371   :  { %1117 = vmatprep.subr.bf16.mxu1 %v1375_v0 }
 0x374   :  { %1118 = vmatpush3.bf16.msra.mxu1 %v1185_v58 }
 0x375   :  { %1119 = vmatprep.subr.bf16.mxu1 %v1375_v0 }
 0x378   :  { %1120 = vmatpush3.bf16.msra.mxu1 %v1186_v59 }
 0x379   :  { %1121 = vmatprep.subr.bf16.mxu1 %v1375_v0 }
 0x37c   :  { %1122 = vmatpush3.bf16.msra.mxu1 %v1187_v60 }
 0x432   :  { %v600_v36 = vpop.f32.mrb[4].mxu1 }
 0x433   :  { %v601_v37 = vadd.f32 %v921_v35, %v600_v36  ;;  %v1085_v38 = vpop.f32.mrb[5].mxu1 }
 0x434   :  { %v603_v39 = vpop.f32.mrb[6].mxu1 }
 0x435   :  { %v930_v40 = vmul.f32 -1.442695, %v601_v37  ;;  %v604_v41 = vadd.f32 %v921_v35, %v603_v39  ;;  %v1086_v42 = vpop.f32.mrb[7].mxu1 }
 0x437   :  { %1212 = vpow2.f32 %v930_v40  ;;  %v931_v43 = vmul.f32 -1.442695, %v604_v41 }
 0x439   :  { %1214 = vpow2.f32 %v931_v43 }
 0x441   :  { %v1213_v44 = vpop.eup %1212 }
 0x442   :  { %v613_v45 = vadd.f32 1.0, %v1213_v44 }
 0x443   :  { %v1215_v46 = vpop.eup %1214 }
 0x444   :  { %1216 = vrcp.f32 %v613_v45  ;;  %v614_v47 = vadd.f32 1.0, %v1215_v46 }
 0x446   :  { %1218 = vrcp.f32 %v614_v47 }
 0x44e   :  { %v1217_v48 = vpop.eup %1216 }
 0x44f   :  { %v619_v50 = vmul.f32 %v1217_v48, %v601_v37 }
 0x450   :  { %v1219_v49 = vpop.eup %1218 }
 0x451   :  { %v620_v51 = vmul.f32 %v1219_v49, %v604_v41 }
 0x453   :  { %v621_v52 = vpack.c.bf16 %v620_v51, %v619_v50 }
 0x455   :  { %1104 = vmatmul.mubr.bf16.vlgmr.msra.gmra.mrb[8].mxu0 %v621_v52 }
 0x528   :  { %v729_v62 = vpop.f32.mrb[8].mxu0 }
 0x529   :  { %v730_v63 = vadd.f32 %v933_v61, %v729_v62  ;;  %v1105_v1 = vpop.f32.mrb[9].mxu0 }
 0x52a   :  { %v732_v2 = vpop.f32.mrb[10].mxu0 }
 0x52b   :  { %v942_v3 = vmul.f32 -1.442695, %v730_v63  ;;  %v733_v4 = vadd.f32 %v933_v61, %v732_v2  ;;  %v1106_v5 = vpop.f32.mrb[11].mxu0 }
 0x52d   :  { %1220 = vpow2.f32 %v942_v3  ;;  %v943_v6 = vmul.f32 -1.442695, %v733_v4 }
 0x52f   :  { %1222 = vpow2.f32 %v943_v6 }
 0x537   :  { %v1221_v7 = vpop.eup %1220 }
 0x538   :  { %v742_v8 = vadd.f32 1.0, %v1221_v7 }
 0x539   :  { %v1223_v9 = vpop.eup %1222 }
 0x53a   :  { %1224 = vrcp.f32 %v742_v8  ;;  %v743_v0 = vadd.f32 1.0, %v1223_v9 }
 0x53c   :  { %1226 = vrcp.f32 %v743_v0 }
 0x544   :  { %v1225_v10 = vpop.eup %1224 }
 0x545   :  { %v748_v11 = vmul.f32 %v1225_v10, %v730_v63 }
 0x546   :  { %v1227_v12 = vpop.eup %1226 }
 0x547   :  { %v749_v13 = vmul.f32 %v1227_v12, %v733_v4  ;;  %v750_v14 = vadd.f32 %v748_v11, %v1579_v24 }
 0x549   :  { %v751_v15 = vadd.f32 %v749_v13, %v1582_v25 }
 0x54b   :  { %v752_v16 = vpack.c.bf16 %v751_v15, %v750_v14 }
 0x54d   :  { %1124 = vmatmul.mubr.bf16.vlgmr.msra.gmra.mrb[8].mxu1 %v752_v16 }
 0x620   :  { %v858_v18 = vpop.f32.mrb[8].mxu1 }
 0x621   :  { %v859_v19 = vadd.f32 %v944_v17, %v858_v18  ;;  %v1125_v20 = vpop.f32.mrb[9].mxu1 }
 0x622   :  { %v861_v21 = vpop.f32.mrb[10].mxu1 }
 0x623   :  { %865 = vst [vmem:[#allocation11] sm:$0xff] %v859_v19  ;;  %v862_v22 = vadd.f32 %v944_v17, %v861_v21  ;;  %v1126_v23 = vpop.f32.mrb[11].mxu1 }
 0x625   :  { %866 = vst [vmem:[#allocation11 + $0x8] sm:$0xff] %v862_v22 }
 0x626   :  { %1349 = shalt.err (!%p1346_p2)
}
 0x627   :  { %s1350_s15 = scalar_lea.hbm %s1634_s9, 256 }
 0x628   :  { %p1351_p3 = scmp.ne.s32.totalorder %s1634_s9, %s1350_s15  ;;  %p1354_p4 = scmp.lt.u32.totalorder %s1350_s15, %s1634_s9 }
 0x62a   :  { %p1356_p5 = pnand %p1354_p4, %p1351_p3 }
 0x62c   :  { %1359 = shalt.err (!%p1356_p5)
}
 0x62d   :  { %s1378_s23 = smov 128   ;;  %s1379_s24 = smov 8  }
 0x62e   :  { %878 = dma.vmem_to_hbm [thread:$0]  %s873_s10, 256, %s1634_s9, [#allocation4], %s1378_s23, %s1378_s23, %s1379_s24  }
 0x62f   :  { %1366 = dma.done.wait [#allocation4], 256  }
 0x630   :  { %1367 = vsyncadd [#allocation4], 4294967040 }
 0x631   :  { %882 = vsyncpa [#allocation3], 1 }
 0x632   :  { %883 = vsyncpa [#allocation6], 1 }
 0x633   :  { %884 = vsyncpa [#allocation9], 1 }
 0x634   :  { %885 = vsyncpa [#allocation4], 1 }

</bundles_post_ra>
